<compile_context>
chip_gen: v6e
topology: v6e:2x2x1
jax: 0.10.0
libtpu: 0.0.40
codegen_flags: <defaults>
</compile_context>

<pallas_src>
import functools
import math

import numpy as np
import jax
import jax.numpy as jnp
from jax import lax
from jax.experimental import pallas as pl
from jax.experimental.pallas import tpu as pltpu


# --------------------------------------------------------------------- host-side static constants
def _interp_matrix_np(n_in):
    """Row-interpolation matrix (2*n_in, n_in) for bilinear x2, align_corners=True."""
    n_out = 2 * n_in
    m = np.zeros((n_out, n_in), np.float32)
    if n_in == 1:
        m[:, 0] = 1.0
        return m
    for i in range(n_out):
        src = i * (n_in - 1) / (n_out - 1)
        i0 = int(math.floor(src))
        i1 = min(i0 + 1, n_in - 1)
        w1 = src - i0
        m[i, i0] += 1.0 - w1
        m[i, i1] += w1
    return m


def _upsample_matrix_np(h, w):
    """U^T with up_flat = x_flat @ U^T; U = kron(Mh, Mw).  Shape (H*W, 2H*2W)."""
    return np.kron(_interp_matrix_np(h), _interp_matrix_np(w)).T.astype(np.float32)


def _shift_masks_np(hs, ws):
    """(9, 1, hs*ws) {0,1} masks: validity of the (dy, dx) shifted tap at each output pixel."""
    p = hs * ws
    rows = np.arange(p) // ws
    cols = np.arange(p) % ws
    masks = np.zeros((9, 1, p), np.float32)
    k = 0
    for dy in (-1, 0, 1):
        for dx in (-1, 0, 1):
            ok = (rows + dy >= 0) & (rows + dy < hs) & (cols + dx >= 0) & (cols + dx < ws)
            masks[k, 0, :] = ok.astype(np.float32)
            k += 1
    return masks


# --------------------------------------------------------------------- kernel
def _conv3x3_flat(u, w9_ref, b_ref, m9_ref, ws):
    """3x3 / stride 1 / pad 1 conv on a channels-major, spatially-flattened tile.

    u      : (Cin, Hs*Ws) activation, spatial flattened row-major on the lane axis.
    w9_ref : (9, Cout, Cin) weights, k = (dy+1)*3 + (dx+1).
    b_ref  : (Cout, 1) bias.
    m9_ref : (9, 1, Hs*Ws) validity masks for each shifted tap.
    ws     : static row width Ws (used for the flattened shift offsets).
    """
    cout = w9_ref.shape[1]
    p = u.shape[-1]
    acc = jnp.zeros((cout, p), jnp.float32)
    k = 0
    for dy in (-1, 0, 1):
        for dx in (-1, 0, 1):
            off = dy * ws + dx
            if off == 0:
                tap = u
            else:
                # tap[:, q] = u[:, q + off] (circular wrap killed by the 0/1 mask)
                tap = pltpu.roll(u, shift=(-off) % p, axis=1) * m9_ref[k]
            acc = acc + jnp.dot(w9_ref[k], tap, preferred_element_type=jnp.float32)
            k += 1
    return acc + b_ref[...]


def _global_net_kernel(x_ref, w41_ref, b41_ref, u1t_ref, w42_ref, b42_ref, m1_ref,
                       w31_ref, b31_ref, u2t_ref, w32_ref, b32_ref, m2_ref, o_ref,
                       *, ws1, ws2):
    f32 = jnp.float32
    x0 = x_ref[...]                                                          # (C5, H*W)
    # I4_1: 1x1 conv = channel-mixing matmul (spatial on lanes)
    a1 = jnp.dot(w41_ref[...], x0, preferred_element_type=f32) + b41_ref[...]
    # I4_up: bilinear x2, align_corners=True, as one matmul vs kron(Mh, Mw)^T
    u1 = jnp.dot(a1, u1t_ref[...], preferred_element_type=f32)               # (F, 4*H*W)
    # I4_2 + ReLU: 3x3 conv via 9 rolled+masked taps, fully in VMEM
    a2 = jnp.maximum(_conv3x3_flat(u1, w42_ref, b42_ref, m1_ref, ws1), 0.0)
    # I3_1: 1x1 conv
    a3 = jnp.dot(w31_ref[...], a2, preferred_element_type=f32) + b31_ref[...]
    # I3_up
    u2 = jnp.dot(a3, u2t_ref[...], preferred_element_type=f32)               # (F, 16*H*W)
    # I3_2 (no ReLU), lane-dense store
    o_ref[...] = _conv3x3_flat(u2, w32_ref, b32_ref, m2_ref, ws2).astype(o_ref.dtype)


# --------------------------------------------------------------------- wrapper
def global_net_forward(c5_nchw, params):
    """Exact GlobalNet.forward; NCHW in, NCHW out; single fused Pallas kernel."""
    w41, b41, w42, b42, w31, b31, w32, b32 = params
    n, c5, h, w = c5_nchw.shape
    feat = w41.shape[0]
    h1, w1 = 2 * h, 2 * w
    h2, w2 = 2 * h1, 2 * w1
    q0, q1, q2 = h * w, h1 * w1, h2 * w2

    # NOTE: kron upsample matrices scale as (H*W)^2 * 4 bytes; fine for the small
    # feature maps this head sees (<= 1 MiB here).
    # TODO(synk): switch to separable per-axis interp matmuls inside the kernel if
    # spatial dims grow beyond ~64x64 (keeps VMEM / HBM constant traffic bounded).

    x_flat = c5_nchw.reshape(n, c5, q0).astype(jnp.float32)

    u1t = jnp.asarray(_upsample_matrix_np(h, w))          # (q0, q1)
    u2t = jnp.asarray(_upsample_matrix_np(h1, w1))        # (q1, q2)
    m1 = jnp.asarray(_shift_masks_np(h1, w1))             # (9, 1, q1)
    m2 = jnp.asarray(_shift_masks_np(h2, w2))             # (9, 1, q2)

    w41m = w41.reshape(feat, c5).astype(jnp.float32)
    w31m = w31.reshape(feat, feat).astype(jnp.float32)
    w42k = jnp.transpose(w42, (2, 3, 0, 1)).reshape(9, feat, feat).astype(jnp.float32)
    w32k = jnp.transpose(w32, (2, 3, 0, 1)).reshape(9, feat, feat).astype(jnp.float32)
    b41c = b41.reshape(feat, 1).astype(jnp.float32)
    b42c = b42.reshape(feat, 1).astype(jnp.float32)
    b31c = b31.reshape(feat, 1).astype(jnp.float32)
    b32c = b32.reshape(feat, 1).astype(jnp.float32)

    def _bcast(shape):  # constant operand: same (full) block for every grid step
        zeros = (0,) * len(shape)
        return pl.BlockSpec(shape, lambda *_: zeros)

    out = pl.pallas_call(
        functools.partial(_global_net_kernel, ws1=w1, ws2=w2),
        out_shape=jax.ShapeDtypeStruct((n, feat, q2), jnp.float32),
        grid_spec=pltpu.PrefetchScalarGridSpec(
            num_scalar_prefetch=0,
            grid=(n,),
            in_specs=[
                pl.BlockSpec((None, c5, q0), lambda i: (i, 0, 0)),             # batch elem
                _bcast((feat, c5)), _bcast((feat, 1)),                          # I4_1
                _bcast((q0, q1)),                                               # upsample 1
                _bcast((9, feat, feat)), _bcast((feat, 1)), _bcast((9, 1, q1)), # I4_2
                _bcast((feat, feat)), _bcast((feat, 1)),                        # I3_1
                _bcast((q1, q2)),                                               # upsample 2
                _bcast((9, feat, feat)), _bcast((feat, 1)), _bcast((9, 1, q2)), # I3_2
            ],
            out_specs=pl.BlockSpec((None, feat, q2), lambda i: (i, 0, 0)),
        ),
        compiler_params=pltpu.CompilerParams(
            dimension_semantics=("parallel",)),   # batch -> both TensorCores on v7x
    )(x_flat, w41m, b41c, u1t, w42k, b42c, m1, w31m, b31c, u2t, w32k, b32c, m2)

    return out.reshape(n, feat, h2, w2)


# --------------------------------------------------------------------- pure-JAX reference
def _ref_conv(x_nchw, w_oihw, b, pad):
    dn = lax.conv_dimension_numbers(x_nchw.shape, w_oihw.shape, ('NCHW', 'OIHW', 'NCHW'))
    y = lax.conv_general_dilated(x_nchw, w_oihw, (1, 1), [(pad, pad), (pad, pad)],
                                 dimension_numbers=dn)
    return y + b.reshape(1, -1, 1, 1)


def _ref_upsample2x(x_nchw):
    _, _, h, w = x_nchw.shape
    mh = jnp.asarray(_interp_matrix_np(h))
    mw = jnp.asarray(_interp_matrix_np(w))
    y = jnp.einsum('oh,nchw->ncow', mh, x_nchw)
    return jnp.einsum('pw,ncow->ncop', mw, y)


def ref_forward(c5_nchw, params):
    w41, b41, w42, b42, w31, b31, w32, b32 = params
    i4_1 = _ref_conv(c5_nchw, w41, b41, 0)
    i4_up = _ref_upsample2x(i4_1)
    i4_relu = jnp.maximum(_ref_conv(i4_up, w42, b42, 1), 0.0)
    i3_1 = _ref_conv(i4_relu, w31, b31, 0)
    i3_up = _ref_upsample2x(i3_1)
    return _ref_conv(i3_up, w32, b32, 1)


# --------------------------------------------------------------------- main
if __name__ == "__main__":
    batch, C5_size, feature_size, H, W = 2, 4, 8, 8, 8

    key = jax.random.PRNGKey(0)
    keys = jax.random.split(key, 9)

    def init_conv(kw, kb, cin, cout, ksz):
        # matches GlobalNet.init_params: weight ~ N(0, sqrt(2/(k*k*cout)))
        nfan = ksz * ksz * cout
        wgt = jax.random.normal(kw, (cout, cin, ksz, ksz), jnp.float32) * math.sqrt(2.0 / nfan)
        bia = 0.01 * jax.random.normal(kb, (cout,), jnp.float32)
        return wgt, bia

    w41, b41 = init_conv(keys[0], keys[1], C5_size, feature_size, 1)
    w42, b42 = init_conv(keys[2], keys[3], feature_size, feature_size, 3)
    w31, b31 = init_conv(keys[4], keys[5], feature_size, feature_size, 1)
    w32, b32 = init_conv(keys[6], keys[7], feature_size, feature_size, 3)
    params = (w41, b41, w42, b42, w31, b31, w32, b32)

    c5 = jax.random.normal(keys[8], (batch, C5_size, H, W), jnp.float32)  # NCHW like PyTorch

    out = jax.block_until_ready(global_net_forward(c5, params))
    assert out.shape == (batch, feature_size, 4 * H, 4 * W), out.shape

    ref = jax.block_until_ready(ref_forward(c5, params))
    np.testing.assert_allclose(np.asarray(out), np.asarray(ref), rtol=1e-4, atol=1e-4)

    print("KERNEL_OK")
</pallas_src>

<mosaic_0001>
module attributes {stable_mosaic.version = 11 : i64} {
  func.func @_global_net_kernel(%arg0: i32, %arg1: memref<1x4x64xf32, #tpu.memory_space<vmem>>, %arg2: memref<8x4xf32, #tpu.memory_space<vmem>>, %arg3: memref<8x1xf32, #tpu.memory_space<vmem>>, %arg4: memref<64x256xf32, #tpu.memory_space<vmem>>, %arg5: memref<9x8x8xf32, #tpu.memory_space<vmem>>, %arg6: memref<8x1xf32, #tpu.memory_space<vmem>>, %arg7: memref<9x1x256xf32, #tpu.memory_space<vmem>>, %arg8: memref<8x8xf32, #tpu.memory_space<vmem>>, %arg9: memref<8x1xf32, #tpu.memory_space<vmem>>, %arg10: memref<256x1024xf32, #tpu.memory_space<vmem>>, %arg11: memref<9x8x8xf32, #tpu.memory_space<vmem>>, %arg12: memref<8x1xf32, #tpu.memory_space<vmem>>, %arg13: memref<9x1x1024xf32, #tpu.memory_space<vmem>>, %arg14: memref<1x8x1024xf32, #tpu.memory_space<vmem>>) attributes {dimension_semantics = [#tpu.dimension_semantics<parallel>], iteration_bounds = array<i64: 2>, scalar_prefetch = 0 : i64, scratch_operands = 0 : i64, tpu.core_type = #tpu.core_type<tc>, window_params = [{transform_indices = @transform_0, window_bounds = array<i64: 1, 4, 64>}, {pipeline_mode = #tpu.pipeline_mode<synchronous>, transform_indices = @transform_1, window_bounds = array<i64: 8, 4>}, {pipeline_mode = #tpu.pipeline_mode<synchronous>, transform_indices = @transform_2, window_bounds = array<i64: 8, 1>}, {pipeline_mode = #tpu.pipeline_mode<synchronous>, transform_indices = @transform_3, window_bounds = array<i64: 64, 256>}, {pipeline_mode = #tpu.pipeline_mode<synchronous>, transform_indices = @transform_4, window_bounds = array<i64: 9, 8, 8>}, {pipeline_mode = #tpu.pipeline_mode<synchronous>, transform_indices = @transform_5, window_bounds = array<i64: 8, 1>}, {pipeline_mode = #tpu.pipeline_mode<synchronous>, transform_indices = @transform_6, window_bounds = array<i64: 9, 1, 256>}, {pipeline_mode = #tpu.pipeline_mode<synchronous>, transform_indices = @transform_7, window_bounds = array<i64: 8, 8>}, {pipeline_mode = #tpu.pipeline_mode<synchronous>, transform_indices = @transform_8, window_bounds = array<i64: 8, 1>}, {pipeline_mode = #tpu.pipeline_mode<synchronous>, transform_indices = @transform_9, window_bounds = array<i64: 256, 1024>}, {pipeline_mode = #tpu.pipeline_mode<synchronous>, transform_indices = @transform_10, window_bounds = array<i64: 9, 8, 8>}, {pipeline_mode = #tpu.pipeline_mode<synchronous>, transform_indices = @transform_11, window_bounds = array<i64: 8, 1>}, {pipeline_mode = #tpu.pipeline_mode<synchronous>, transform_indices = @transform_12, window_bounds = array<i64: 9, 1, 1024>}, {transform_indices = @transform_13, window_bounds = array<i64: 1, 8, 1024>}]} {
    %c0 = arith.constant 0 : index
    %c0_0 = arith.constant 0 : index
    %c0_1 = arith.constant 0 : index
    %0 = vector.load %arg1[%c0, %c0_0, %c0_1] : memref<1x4x64xf32, #tpu.memory_space<vmem>>, vector<1x4x64xf32>
    %1 = vector.shape_cast %0 : vector<1x4x64xf32> to vector<4x64xf32>
    %c0_2 = arith.constant 0 : index
    %c0_3 = arith.constant 0 : index
    %2 = vector.load %arg2[%c0_2, %c0_3] : memref<8x4xf32, #tpu.memory_space<vmem>>, vector<8x4xf32>
    %cst = arith.constant dense<0.000000e+00> : vector<8x64xf32>
    %3 = tpu.matmul %2, %1, %cst {dimension_numbers = #tpu.dot_dimension_numbers<[1], [0], [0], [1], [0, 0, 1, 1], [], []>} : vector<8x4xf32>, vector<4x64xf32>, vector<8x64xf32> -> vector<8x64xf32>
    %c0_4 = arith.constant 0 : index
    %c0_5 = arith.constant 0 : index
    %4 = vector.load %arg3[%c0_4, %c0_5] : memref<8x1xf32, #tpu.memory_space<vmem>>, vector<8x1xf32>
    %5 = vector.broadcast %4 : vector<8x1xf32> to vector<8x64xf32>
    %6 = arith.addf %3, %5 : vector<8x64xf32>
    %c0_6 = arith.constant 0 : index
    %c0_7 = arith.constant 0 : index
    %7 = vector.load %arg4[%c0_6, %c0_7] : memref<64x256xf32, #tpu.memory_space<vmem>>, vector<64x256xf32>
    %cst_8 = arith.constant dense<0.000000e+00> : vector<8x256xf32>
    %8 = tpu.matmul %6, %7, %cst_8 {dimension_numbers = #tpu.dot_dimension_numbers<[1], [0], [0], [1], [0, 0, 1, 1], [], []>} : vector<8x64xf32>, vector<64x256xf32>, vector<8x256xf32> -> vector<8x256xf32>
    %cst_9 = arith.constant 0.000000e+00 : f32
    %9 = vector.broadcast %cst_9 : f32 to vector<8x256xf32>
    %c17_i32 = arith.constant 17 : i32
    %10 = tpu.dynamic_rotate %8 by %c17_i32 dim 1 : vector<8x256xf32>, i32 -> vector<8x256xf32>
    %c0_10 = arith.constant 0 : index
    %c0_11 = arith.constant 0 : index
    %c0_12 = arith.constant 0 : index
    %11 = vector.load %arg7[%c0_10, %c0_11, %c0_12] : memref<9x1x256xf32, #tpu.memory_space<vmem>>, vector<1x1x256xf32>
    %12 = vector.shape_cast %11 : vector<1x1x256xf32> to vector<1x256xf32>
    %13 = vector.broadcast %12 : vector<1x256xf32> to vector<8x256xf32>
    %14 = arith.mulf %10, %13 : vector<8x256xf32>
    %c0_13 = arith.constant 0 : index
    %c0_14 = arith.constant 0 : index
    %c0_15 = arith.constant 0 : index
    %15 = vector.load %arg5[%c0_13, %c0_14, %c0_15] : memref<9x8x8xf32, #tpu.memory_space<vmem>>, vector<1x8x8xf32>
    %16 = vector.shape_cast %15 : vector<1x8x8xf32> to vector<8x8xf32>
    %cst_16 = arith.constant dense<0.000000e+00> : vector<8x256xf32>
    %17 = tpu.matmul %16, %14, %cst_16 {dimension_numbers = #tpu.dot_dimension_numbers<[1], [0], [0], [1], [0, 0, 1, 1], [], []>} : vector<8x8xf32>, vector<8x256xf32>, vector<8x256xf32> -> vector<8x256xf32>
    %18 = arith.addf %9, %17 : vector<8x256xf32>
    %c16_i32 = arith.constant 16 : i32
    %19 = tpu.dynamic_rotate %8 by %c16_i32 dim 1 : vector<8x256xf32>, i32 -> vector<8x256xf32>
    %c1 = arith.constant 1 : index
    %c0_17 = arith.constant 0 : index
    %c0_18 = arith.constant 0 : index
    %20 = vector.load %arg7[%c1, %c0_17, %c0_18] : memref<9x1x256xf32, #tpu.memory_space<vmem>>, vector<1x1x256xf32>
    %21 = vector.shape_cast %20 : vector<1x1x256xf32> to vector<1x256xf32>
    %22 = vector.broadcast %21 : vector<1x256xf32> to vector<8x256xf32>
    %23 = arith.mulf %19, %22 : vector<8x256xf32>
    %c1_19 = arith.constant 1 : index
    %c0_20 = arith.constant 0 : index
    %c0_21 = arith.constant 0 : index
    %24 = vector.load %arg5[%c1_19, %c0_20, %c0_21] : memref<9x8x8xf32, #tpu.memory_space<vmem>>, vector<1x8x8xf32>
    %25 = vector.shape_cast %24 : vector<1x8x8xf32> to vector<8x8xf32>
    %cst_22 = arith.constant dense<0.000000e+00> : vector<8x256xf32>
    %26 = tpu.matmul %25, %23, %cst_22 {dimension_numbers = #tpu.dot_dimension_numbers<[1], [0], [0], [1], [0, 0, 1, 1], [], []>} : vector<8x8xf32>, vector<8x256xf32>, vector<8x256xf32> -> vector<8x256xf32>
    %27 = arith.addf %18, %26 : vector<8x256xf32>
    %c15_i32 = arith.constant 15 : i32
    %28 = tpu.dynamic_rotate %8 by %c15_i32 dim 1 : vector<8x256xf32>, i32 -> vector<8x256xf32>
    %c2 = arith.constant 2 : index
    %c0_23 = arith.constant 0 : index
    %c0_24 = arith.constant 0 : index
    %29 = vector.load %arg7[%c2, %c0_23, %c0_24] : memref<9x1x256xf32, #tpu.memory_space<vmem>>, vector<1x1x256xf32>
    %30 = vector.shape_cast %29 : vector<1x1x256xf32> to vector<1x256xf32>
    %31 = vector.broadcast %30 : vector<1x256xf32> to vector<8x256xf32>
    %32 = arith.mulf %28, %31 : vector<8x256xf32>
    %c2_25 = arith.constant 2 : index
    %c0_26 = arith.constant 0 : index
    %c0_27 = arith.constant 0 : index
    %33 = vector.load %arg5[%c2_25, %c0_26, %c0_27] : memref<9x8x8xf32, #tpu.memory_space<vmem>>, vector<1x8x8xf32>
    %34 = vector.shape_cast %33 : vector<1x8x8xf32> to vector<8x8xf32>
    %cst_28 = arith.constant dense<0.000000e+00> : vector<8x256xf32>
    %35 = tpu.matmul %34, %32, %cst_28 {dimension_numbers = #tpu.dot_dimension_numbers<[1], [0], [0], [1], [0, 0, 1, 1], [], []>} : vector<8x8xf32>, vector<8x256xf32>, vector<8x256xf32> -> vector<8x256xf32>
    %36 = arith.addf %27, %35 : vector<8x256xf32>
    %c1_i32 = arith.constant 1 : i32
    %37 = tpu.dynamic_rotate %8 by %c1_i32 dim 1 : vector<8x256xf32>, i32 -> vector<8x256xf32>
    %c3 = arith.constant 3 : index
    %c0_29 = arith.constant 0 : index
    %c0_30 = arith.constant 0 : index
    %38 = vector.load %arg7[%c3, %c0_29, %c0_30] : memref<9x1x256xf32, #tpu.memory_space<vmem>>, vector<1x1x256xf32>
    %39 = vector.shape_cast %38 : vector<1x1x256xf32> to vector<1x256xf32>
    %40 = vector.broadcast %39 : vector<1x256xf32> to vector<8x256xf32>
    %41 = arith.mulf %37, %40 : vector<8x256xf32>
    %c3_31 = arith.constant 3 : index
    %c0_32 = arith.constant 0 : index
    %c0_33 = arith.constant 0 : index
    %42 = vector.load %arg5[%c3_31, %c0_32, %c0_33] : memref<9x8x8xf32, #tpu.memory_space<vmem>>, vector<1x8x8xf32>
    %43 = vector.shape_cast %42 : vector<1x8x8xf32> to vector<8x8xf32>
    %cst_34 = arith.constant dense<0.000000e+00> : vector<8x256xf32>
    %44 = tpu.matmul %43, %41, %cst_34 {dimension_numbers = #tpu.dot_dimension_numbers<[1], [0], [0], [1], [0, 0, 1, 1], [], []>} : vector<8x8xf32>, vector<8x256xf32>, vector<8x256xf32> -> vector<8x256xf32>
    %45 = arith.addf %36, %44 : vector<8x256xf32>
    %c4 = arith.constant 4 : index
    %c0_35 = arith.constant 0 : index
    %c0_36 = arith.constant 0 : index
    %46 = vector.load %arg5[%c4, %c0_35, %c0_36] : memref<9x8x8xf32, #tpu.memory_space<vmem>>, vector<1x8x8xf32>
    %47 = vector.shape_cast %46 : vector<1x8x8xf32> to vector<8x8xf32>
    %cst_37 = arith.constant dense<0.000000e+00> : vector<8x256xf32>
    %48 = tpu.matmul %47, %8, %cst_37 {dimension_numbers = #tpu.dot_dimension_numbers<[1], [0], [0], [1], [0, 0, 1, 1], [], []>} : vector<8x8xf32>, vector<8x256xf32>, vector<8x256xf32> -> vector<8x256xf32>
    %49 = arith.addf %45, %48 : vector<8x256xf32>
    %c255_i32 = arith.constant 255 : i32
    %50 = tpu.dynamic_rotate %8 by %c255_i32 dim 1 : vector<8x256xf32>, i32 -> vector<8x256xf32>
    %c5 = arith.constant 5 : index
    %c0_38 = arith.constant 0 : index
    %c0_39 = arith.constant 0 : index
    %51 = vector.load %arg7[%c5, %c0_38, %c0_39] : memref<9x1x256xf32, #tpu.memory_space<vmem>>, vector<1x1x256xf32>
    %52 = vector.shape_cast %51 : vector<1x1x256xf32> to vector<1x256xf32>
    %53 = vector.broadcast %52 : vector<1x256xf32> to vector<8x256xf32>
    %54 = arith.mulf %50, %53 : vector<8x256xf32>
    %c5_40 = arith.constant 5 : index
    %c0_41 = arith.constant 0 : index
    %c0_42 = arith.constant 0 : index
    %55 = vector.load %arg5[%c5_40, %c0_41, %c0_42] : memref<9x8x8xf32, #tpu.memory_space<vmem>>, vector<1x8x8xf32>
    %56 = vector.shape_cast %55 : vector<1x8x8xf32> to vector<8x8xf32>
    %cst_43 = arith.constant dense<0.000000e+00> : vector<8x256xf32>
    %57 = tpu.matmul %56, %54, %cst_43 {dimension_numbers = #tpu.dot_dimension_numbers<[1], [0], [0], [1], [0, 0, 1, 1], [], []>} : vector<8x8xf32>, vector<8x256xf32>, vector<8x256xf32> -> vector<8x256xf32>
    %58 = arith.addf %49, %57 : vector<8x256xf32>
    %c241_i32 = arith.constant 241 : i32
    %59 = tpu.dynamic_rotate %8 by %c241_i32 dim 1 : vector<8x256xf32>, i32 -> vector<8x256xf32>
    %c6 = arith.constant 6 : index
    %c0_44 = arith.constant 0 : index
    %c0_45 = arith.constant 0 : index
    %60 = vector.load %arg7[%c6, %c0_44, %c0_45] : memref<9x1x256xf32, #tpu.memory_space<vmem>>, vector<1x1x256xf32>
    %61 = vector.shape_cast %60 : vector<1x1x256xf32> to vector<1x256xf32>
    %62 = vector.broadcast %61 : vector<1x256xf32> to vector<8x256xf32>
    %63 = arith.mulf %59, %62 : vector<8x256xf32>
    %c6_46 = arith.constant 6 : index
    %c0_47 = arith.constant 0 : index
    %c0_48 = arith.constant 0 : index
    %64 = vector.load %arg5[%c6_46, %c0_47, %c0_48] : memref<9x8x8xf32, #tpu.memory_space<vmem>>, vector<1x8x8xf32>
    %65 = vector.shape_cast %64 : vector<1x8x8xf32> to vector<8x8xf32>
    %cst_49 = arith.constant dense<0.000000e+00> : vector<8x256xf32>
    %66 = tpu.matmul %65, %63, %cst_49 {dimension_numbers = #tpu.dot_dimension_numbers<[1], [0], [0], [1], [0, 0, 1, 1], [], []>} : vector<8x8xf32>, vector<8x256xf32>, vector<8x256xf32> -> vector<8x256xf32>
    %67 = arith.addf %58, %66 : vector<8x256xf32>
    %c240_i32 = arith.constant 240 : i32
    %68 = tpu.dynamic_rotate %8 by %c240_i32 dim 1 : vector<8x256xf32>, i32 -> vector<8x256xf32>
    %c7 = arith.constant 7 : index
    %c0_50 = arith.constant 0 : index
    %c0_51 = arith.constant 0 : index
    %69 = vector.load %arg7[%c7, %c0_50, %c0_51] : memref<9x1x256xf32, #tpu.memory_space<vmem>>, vector<1x1x256xf32>
    %70 = vector.shape_cast %69 : vector<1x1x256xf32> to vector<1x256xf32>
    %71 = vector.broadcast %70 : vector<1x256xf32> to vector<8x256xf32>
    %72 = arith.mulf %68, %71 : vector<8x256xf32>
    %c7_52 = arith.constant 7 : index
    %c0_53 = arith.constant 0 : index
    %c0_54 = arith.constant 0 : index
    %73 = vector.load %arg5[%c7_52, %c0_53, %c0_54] : memref<9x8x8xf32, #tpu.memory_space<vmem>>, vector<1x8x8xf32>
    %74 = vector.shape_cast %73 : vector<1x8x8xf32> to vector<8x8xf32>
    %cst_55 = arith.constant dense<0.000000e+00> : vector<8x256xf32>
    %75 = tpu.matmul %74, %72, %cst_55 {dimension_numbers = #tpu.dot_dimension_numbers<[1], [0], [0], [1], [0, 0, 1, 1], [], []>} : vector<8x8xf32>, vector<8x256xf32>, vector<8x256xf32> -> vector<8x256xf32>
    %76 = arith.addf %67, %75 : vector<8x256xf32>
    %c239_i32 = arith.constant 239 : i32
    %77 = tpu.dynamic_rotate %8 by %c239_i32 dim 1 : vector<8x256xf32>, i32 -> vector<8x256xf32>
    %c8 = arith.constant 8 : index
    %c0_56 = arith.constant 0 : index
    %c0_57 = arith.constant 0 : index
    %78 = vector.load %arg7[%c8, %c0_56, %c0_57] : memref<9x1x256xf32, #tpu.memory_space<vmem>>, vector<1x1x256xf32>
    %79 = vector.shape_cast %78 : vector<1x1x256xf32> to vector<1x256xf32>
    %80 = vector.broadcast %79 : vector<1x256xf32> to vector<8x256xf32>
    %81 = arith.mulf %77, %80 : vector<8x256xf32>
    %c8_58 = arith.constant 8 : index
    %c0_59 = arith.constant 0 : index
    %c0_60 = arith.constant 0 : index
    %82 = vector.load %arg5[%c8_58, %c0_59, %c0_60] : memref<9x8x8xf32, #tpu.memory_space<vmem>>, vector<1x8x8xf32>
    %83 = vector.shape_cast %82 : vector<1x8x8xf32> to vector<8x8xf32>
    %cst_61 = arith.constant dense<0.000000e+00> : vector<8x256xf32>
    %84 = tpu.matmul %83, %81, %cst_61 {dimension_numbers = #tpu.dot_dimension_numbers<[1], [0], [0], [1], [0, 0, 1, 1], [], []>} : vector<8x8xf32>, vector<8x256xf32>, vector<8x256xf32> -> vector<8x256xf32>
    %85 = arith.addf %76, %84 : vector<8x256xf32>
    %c0_62 = arith.constant 0 : index
    %c0_63 = arith.constant 0 : index
    %86 = vector.load %arg6[%c0_62, %c0_63] : memref<8x1xf32, #tpu.memory_space<vmem>>, vector<8x1xf32>
    %87 = vector.broadcast %86 : vector<8x1xf32> to vector<8x256xf32>
    %88 = arith.addf %85, %87 : vector<8x256xf32>
    %cst_64 = arith.constant 0.000000e+00 : f32
    %89 = vector.broadcast %cst_64 : f32 to vector<8x256xf32>
    %90 = arith.maximumf %88, %89 : vector<8x256xf32>
    %c0_65 = arith.constant 0 : index
    %c0_66 = arith.constant 0 : index
    %91 = vector.load %arg8[%c0_65, %c0_66] : memref<8x8xf32, #tpu.memory_space<vmem>>, vector<8x8xf32>
    %cst_67 = arith.constant dense<0.000000e+00> : vector<8x256xf32>
    %92 = tpu.matmul %91, %90, %cst_67 {dimension_numbers = #tpu.dot_dimension_numbers<[1], [0], [0], [1], [0, 0, 1, 1], [], []>} : vector<8x8xf32>, vector<8x256xf32>, vector<8x256xf32> -> vector<8x256xf32>
    %c0_68 = arith.constant 0 : index
    %c0_69 = arith.constant 0 : index
    %93 = vector.load %arg9[%c0_68, %c0_69] : memref<8x1xf32, #tpu.memory_space<vmem>>, vector<8x1xf32>
    %94 = vector.broadcast %93 : vector<8x1xf32> to vector<8x256xf32>
    %95 = arith.addf %92, %94 : vector<8x256xf32>
    %c0_70 = arith.constant 0 : index
    %c0_71 = arith.constant 0 : index
    %96 = vector.load %arg10[%c0_70, %c0_71] : memref<256x1024xf32, #tpu.memory_space<vmem>>, vector<256x1024xf32>
    %cst_72 = arith.constant dense<0.000000e+00> : vector<8x1024xf32>
    %97 = tpu.matmul %95, %96, %cst_72 {dimension_numbers = #tpu.dot_dimension_numbers<[1], [0], [0], [1], [0, 0, 1, 1], [], []>} : vector<8x256xf32>, vector<256x1024xf32>, vector<8x1024xf32> -> vector<8x1024xf32>
    %cst_73 = arith.constant 0.000000e+00 : f32
    %98 = vector.broadcast %cst_73 : f32 to vector<8x1024xf32>
    %c33_i32 = arith.constant 33 : i32
    %99 = tpu.dynamic_rotate %97 by %c33_i32 dim 1 : vector<8x1024xf32>, i32 -> vector<8x1024xf32>
    %c0_74 = arith.constant 0 : index
    %c0_75 = arith.constant 0 : index
    %c0_76 = arith.constant 0 : index
    %100 = vector.load %arg13[%c0_74, %c0_75, %c0_76] : memref<9x1x1024xf32, #tpu.memory_space<vmem>>, vector<1x1x1024xf32>
    %101 = vector.shape_cast %100 : vector<1x1x1024xf32> to vector<1x1024xf32>
    %102 = vector.broadcast %101 : vector<1x1024xf32> to vector<8x1024xf32>
    %103 = arith.mulf %99, %102 : vector<8x1024xf32>
    %c0_77 = arith.constant 0 : index
    %c0_78 = arith.constant 0 : index
    %c0_79 = arith.constant 0 : index
    %104 = vector.load %arg11[%c0_77, %c0_78, %c0_79] : memref<9x8x8xf32, #tpu.memory_space<vmem>>, vector<1x8x8xf32>
    %105 = vector.shape_cast %104 : vector<1x8x8xf32> to vector<8x8xf32>
    %cst_80 = arith.constant dense<0.000000e+00> : vector<8x1024xf32>
    %106 = tpu.matmul %105, %103, %cst_80 {dimension_numbers = #tpu.dot_dimension_numbers<[1], [0], [0], [1], [0, 0, 1, 1], [], []>} : vector<8x8xf32>, vector<8x1024xf32>, vector<8x1024xf32> -> vector<8x1024xf32>
    %107 = arith.addf %98, %106 : vector<8x1024xf32>
    %c32_i32 = arith.constant 32 : i32
    %108 = tpu.dynamic_rotate %97 by %c32_i32 dim 1 : vector<8x1024xf32>, i32 -> vector<8x1024xf32>
    %c1_81 = arith.constant 1 : index
    %c0_82 = arith.constant 0 : index
    %c0_83 = arith.constant 0 : index
    %109 = vector.load %arg13[%c1_81, %c0_82, %c0_83] : memref<9x1x1024xf32, #tpu.memory_space<vmem>>, vector<1x1x1024xf32>
    %110 = vector.shape_cast %109 : vector<1x1x1024xf32> to vector<1x1024xf32>
    %111 = vector.broadcast %110 : vector<1x1024xf32> to vector<8x1024xf32>
    %112 = arith.mulf %108, %111 : vector<8x1024xf32>
    %c1_84 = arith.constant 1 : index
    %c0_85 = arith.constant 0 : index
    %c0_86 = arith.constant 0 : index
    %113 = vector.load %arg11[%c1_84, %c0_85, %c0_86] : memref<9x8x8xf32, #tpu.memory_space<vmem>>, vector<1x8x8xf32>
    %114 = vector.shape_cast %113 : vector<1x8x8xf32> to vector<8x8xf32>
    %cst_87 = arith.constant dense<0.000000e+00> : vector<8x1024xf32>
    %115 = tpu.matmul %114, %112, %cst_87 {dimension_numbers = #tpu.dot_dimension_numbers<[1], [0], [0], [1], [0, 0, 1, 1], [], []>} : vector<8x8xf32>, vector<8x1024xf32>, vector<8x1024xf32> -> vector<8x1024xf32>
    %116 = arith.addf %107, %115 : vector<8x1024xf32>
    %c31_i32 = arith.constant 31 : i32
    %117 = tpu.dynamic_rotate %97 by %c31_i32 dim 1 : vector<8x1024xf32>, i32 -> vector<8x1024xf32>
    %c2_88 = arith.constant 2 : index
    %c0_89 = arith.constant 0 : index
    %c0_90 = arith.constant 0 : index
    %118 = vector.load %arg13[%c2_88, %c0_89, %c0_90] : memref<9x1x1024xf32, #tpu.memory_space<vmem>>, vector<1x1x1024xf32>
    %119 = vector.shape_cast %118 : vector<1x1x1024xf32> to vector<1x1024xf32>
    %120 = vector.broadcast %119 : vector<1x1024xf32> to vector<8x1024xf32>
    %121 = arith.mulf %117, %120 : vector<8x1024xf32>
    %c2_91 = arith.constant 2 : index
    %c0_92 = arith.constant 0 : index
    %c0_93 = arith.constant 0 : index
    %122 = vector.load %arg11[%c2_91, %c0_92, %c0_93] : memref<9x8x8xf32, #tpu.memory_space<vmem>>, vector<1x8x8xf32>
    %123 = vector.shape_cast %122 : vector<1x8x8xf32> to vector<8x8xf32>
    %cst_94 = arith.constant dense<0.000000e+00> : vector<8x1024xf32>
    %124 = tpu.matmul %123, %121, %cst_94 {dimension_numbers = #tpu.dot_dimension_numbers<[1], [0], [0], [1], [0, 0, 1, 1], [], []>} : vector<8x8xf32>, vector<8x1024xf32>, vector<8x1024xf32> -> vector<8x1024xf32>
    %125 = arith.addf %116, %124 : vector<8x1024xf32>
    %c1_i32_95 = arith.constant 1 : i32
    %126 = tpu.dynamic_rotate %97 by %c1_i32_95 dim 1 : vector<8x1024xf32>, i32 -> vector<8x1024xf32>
    %c3_96 = arith.constant 3 : index
    %c0_97 = arith.constant 0 : index
    %c0_98 = arith.constant 0 : index
    %127 = vector.load %arg13[%c3_96, %c0_97, %c0_98] : memref<9x1x1024xf32, #tpu.memory_space<vmem>>, vector<1x1x1024xf32>
    %128 = vector.shape_cast %127 : vector<1x1x1024xf32> to vector<1x1024xf32>
    %129 = vector.broadcast %128 : vector<1x1024xf32> to vector<8x1024xf32>
    %130 = arith.mulf %126, %129 : vector<8x1024xf32>
    %c3_99 = arith.constant 3 : index
    %c0_100 = arith.constant 0 : index
    %c0_101 = arith.constant 0 : index
    %131 = vector.load %arg11[%c3_99, %c0_100, %c0_101] : memref<9x8x8xf32, #tpu.memory_space<vmem>>, vector<1x8x8xf32>
    %132 = vector.shape_cast %131 : vector<1x8x8xf32> to vector<8x8xf32>
    %cst_102 = arith.constant dense<0.000000e+00> : vector<8x1024xf32>
    %133 = tpu.matmul %132, %130, %cst_102 {dimension_numbers = #tpu.dot_dimension_numbers<[1], [0], [0], [1], [0, 0, 1, 1], [], []>} : vector<8x8xf32>, vector<8x1024xf32>, vector<8x1024xf32> -> vector<8x1024xf32>
    %134 = arith.addf %125, %133 : vector<8x1024xf32>
    %c4_103 = arith.constant 4 : index
    %c0_104 = arith.constant 0 : index
    %c0_105 = arith.constant 0 : index
    %135 = vector.load %arg11[%c4_103, %c0_104, %c0_105] : memref<9x8x8xf32, #tpu.memory_space<vmem>>, vector<1x8x8xf32>
    %136 = vector.shape_cast %135 : vector<1x8x8xf32> to vector<8x8xf32>
    %cst_106 = arith.constant dense<0.000000e+00> : vector<8x1024xf32>
    %137 = tpu.matmul %136, %97, %cst_106 {dimension_numbers = #tpu.dot_dimension_numbers<[1], [0], [0], [1], [0, 0, 1, 1], [], []>} : vector<8x8xf32>, vector<8x1024xf32>, vector<8x1024xf32> -> vector<8x1024xf32>
    %138 = arith.addf %134, %137 : vector<8x1024xf32>
    %c1023_i32 = arith.constant 1023 : i32
    %139 = tpu.dynamic_rotate %97 by %c1023_i32 dim 1 : vector<8x1024xf32>, i32 -> vector<8x1024xf32>
    %c5_107 = arith.constant 5 : index
    %c0_108 = arith.constant 0 : index
    %c0_109 = arith.constant 0 : index
    %140 = vector.load %arg13[%c5_107, %c0_108, %c0_109] : memref<9x1x1024xf32, #tpu.memory_space<vmem>>, vector<1x1x1024xf32>
    %141 = vector.shape_cast %140 : vector<1x1x1024xf32> to vector<1x1024xf32>
    %142 = vector.broadcast %141 : vector<1x1024xf32> to vector<8x1024xf32>
    %143 = arith.mulf %139, %142 : vector<8x1024xf32>
    %c5_110 = arith.constant 5 : index
    %c0_111 = arith.constant 0 : index
    %c0_112 = arith.constant 0 : index
    %144 = vector.load %arg11[%c5_110, %c0_111, %c0_112] : memref<9x8x8xf32, #tpu.memory_space<vmem>>, vector<1x8x8xf32>
    %145 = vector.shape_cast %144 : vector<1x8x8xf32> to vector<8x8xf32>
    %cst_113 = arith.constant dense<0.000000e+00> : vector<8x1024xf32>
    %146 = tpu.matmul %145, %143, %cst_113 {dimension_numbers = #tpu.dot_dimension_numbers<[1], [0], [0], [1], [0, 0, 1, 1], [], []>} : vector<8x8xf32>, vector<8x1024xf32>, vector<8x1024xf32> -> vector<8x1024xf32>
    %147 = arith.addf %138, %146 : vector<8x1024xf32>
    %c993_i32 = arith.constant 993 : i32
    %148 = tpu.dynamic_rotate %97 by %c993_i32 dim 1 : vector<8x1024xf32>, i32 -> vector<8x1024xf32>
    %c6_114 = arith.constant 6 : index
    %c0_115 = arith.constant 0 : index
    %c0_116 = arith.constant 0 : index
    %149 = vector.load %arg13[%c6_114, %c0_115, %c0_116] : memref<9x1x1024xf32, #tpu.memory_space<vmem>>, vector<1x1x1024xf32>
    %150 = vector.shape_cast %149 : vector<1x1x1024xf32> to vector<1x1024xf32>
    %151 = vector.broadcast %150 : vector<1x1024xf32> to vector<8x1024xf32>
    %152 = arith.mulf %148, %151 : vector<8x1024xf32>
    %c6_117 = arith.constant 6 : index
    %c0_118 = arith.constant 0 : index
    %c0_119 = arith.constant 0 : index
    %153 = vector.load %arg11[%c6_117, %c0_118, %c0_119] : memref<9x8x8xf32, #tpu.memory_space<vmem>>, vector<1x8x8xf32>
    %154 = vector.shape_cast %153 : vector<1x8x8xf32> to vector<8x8xf32>
    %cst_120 = arith.constant dense<0.000000e+00> : vector<8x1024xf32>
    %155 = tpu.matmul %154, %152, %cst_120 {dimension_numbers = #tpu.dot_dimension_numbers<[1], [0], [0], [1], [0, 0, 1, 1], [], []>} : vector<8x8xf32>, vector<8x1024xf32>, vector<8x1024xf32> -> vector<8x1024xf32>
    %156 = arith.addf %147, %155 : vector<8x1024xf32>
    %c992_i32 = arith.constant 992 : i32
    %157 = tpu.dynamic_rotate %97 by %c992_i32 dim 1 : vector<8x1024xf32>, i32 -> vector<8x1024xf32>
    %c7_121 = arith.constant 7 : index
    %c0_122 = arith.constant 0 : index
    %c0_123 = arith.constant 0 : index
    %158 = vector.load %arg13[%c7_121, %c0_122, %c0_123] : memref<9x1x1024xf32, #tpu.memory_space<vmem>>, vector<1x1x1024xf32>
    %159 = vector.shape_cast %158 : vector<1x1x1024xf32> to vector<1x1024xf32>
    %160 = vector.broadcast %159 : vector<1x1024xf32> to vector<8x1024xf32>
    %161 = arith.mulf %157, %160 : vector<8x1024xf32>
    %c7_124 = arith.constant 7 : index
    %c0_125 = arith.constant 0 : index
    %c0_126 = arith.constant 0 : index
    %162 = vector.load %arg11[%c7_124, %c0_125, %c0_126] : memref<9x8x8xf32, #tpu.memory_space<vmem>>, vector<1x8x8xf32>
    %163 = vector.shape_cast %162 : vector<1x8x8xf32> to vector<8x8xf32>
    %cst_127 = arith.constant dense<0.000000e+00> : vector<8x1024xf32>
    %164 = tpu.matmul %163, %161, %cst_127 {dimension_numbers = #tpu.dot_dimension_numbers<[1], [0], [0], [1], [0, 0, 1, 1], [], []>} : vector<8x8xf32>, vector<8x1024xf32>, vector<8x1024xf32> -> vector<8x1024xf32>
    %165 = arith.addf %156, %164 : vector<8x1024xf32>
    %c991_i32 = arith.constant 991 : i32
    %166 = tpu.dynamic_rotate %97 by %c991_i32 dim 1 : vector<8x1024xf32>, i32 -> vector<8x1024xf32>
    %c8_128 = arith.constant 8 : index
    %c0_129 = arith.constant 0 : index
    %c0_130 = arith.constant 0 : index
    %167 = vector.load %arg13[%c8_128, %c0_129, %c0_130] : memref<9x1x1024xf32, #tpu.memory_space<vmem>>, vector<1x1x1024xf32>
    %168 = vector.shape_cast %167 : vector<1x1x1024xf32> to vector<1x1024xf32>
    %169 = vector.broadcast %168 : vector<1x1024xf32> to vector<8x1024xf32>
    %170 = arith.mulf %166, %169 : vector<8x1024xf32>
    %c8_131 = arith.constant 8 : index
    %c0_132 = arith.constant 0 : index
    %c0_133 = arith.constant 0 : index
    %171 = vector.load %arg11[%c8_131, %c0_132, %c0_133] : memref<9x8x8xf32, #tpu.memory_space<vmem>>, vector<1x8x8xf32>
    %172 = vector.shape_cast %171 : vector<1x8x8xf32> to vector<8x8xf32>
    %cst_134 = arith.constant dense<0.000000e+00> : vector<8x1024xf32>
    %173 = tpu.matmul %172, %170, %cst_134 {dimension_numbers = #tpu.dot_dimension_numbers<[1], [0], [0], [1], [0, 0, 1, 1], [], []>} : vector<8x8xf32>, vector<8x1024xf32>, vector<8x1024xf32> -> vector<8x1024xf32>
    %174 = arith.addf %165, %173 : vector<8x1024xf32>
    %c0_135 = arith.constant 0 : index
    %c0_136 = arith.constant 0 : index
    %175 = vector.load %arg12[%c0_135, %c0_136] : memref<8x1xf32, #tpu.memory_space<vmem>>, vector<8x1xf32>
    %176 = vector.broadcast %175 : vector<8x1xf32> to vector<8x1024xf32>
    %177 = arith.addf %174, %176 : vector<8x1024xf32>
    %c0_137 = arith.constant 0 : index
    %c0_138 = arith.constant 0 : index
    %c0_139 = arith.constant 0 : index
    %178 = vector.load %arg14[%c0_137, %c0_138, %c0_139] : memref<1x8x1024xf32, #tpu.memory_space<vmem>>, vector<1x8x1024xf32>
    %179 = vector.shape_cast %178 : vector<1x8x1024xf32> to vector<8x1024xf32>
    %180 = vector.shape_cast %177 : vector<8x1024xf32> to vector<1x8x1024xf32>
    tpu.vector_store %arg14[%c0_137, %c0_138, %c0_139], %180 {strides = array<i32>} : memref<1x8x1024xf32, #tpu.memory_space<vmem>>, vector<1x8x1024xf32>,
    return
  }
  func.func @transform_0(%arg0: i32) -> (i32, i32, i32) {
    %c0_i32 = arith.constant 0 : i32
    %c0_i32_0 = arith.constant 0 : i32
    %c0_i32_1 = arith.constant 0 : i32
    return %arg0, %c0_i32, %c0_i32_0 : i32, i32, i32
  }
  func.func @transform_1(%arg0: i32) -> (i32, i32) {
    %c0_i32 = arith.constant 0 : i32
    %c0_i32_0 = arith.constant 0 : i32
    %c0_i32_1 = arith.constant 0 : i32
    return %c0_i32, %c0_i32_0 : i32, i32
  }
  func.func @transform_2(%arg0: i32) -> (i32, i32) {
    %c0_i32 = arith.constant 0 : i32
    %c0_i32_0 = arith.constant 0 : i32
    %c0_i32_1 = arith.constant 0 : i32
    return %c0_i32, %c0_i32_0 : i32, i32
  }
  func.func @transform_3(%arg0: i32) -> (i32, i32) {
    %c0_i32 = arith.constant 0 : i32
    %c0_i32_0 = arith.constant 0 : i32
    %c0_i32_1 = arith.constant 0 : i32
    return %c0_i32, %c0_i32_0 : i32, i32
  }
  func.func @transform_4(%arg0: i32) -> (i32, i32, i32) {
    %c0_i32 = arith.constant 0 : i32
    %c0_i32_0 = arith.constant 0 : i32
    %c0_i32_1 = arith.constant 0 : i32
    %c0_i32_2 = arith.constant 0 : i32
    return %c0_i32, %c0_i32_0, %c0_i32_1 : i32, i32, i32
  }
  func.func @transform_5(%arg0: i32) -> (i32, i32) {
    %c0_i32 = arith.constant 0 : i32
    %c0_i32_0 = arith.constant 0 : i32
    %c0_i32_1 = arith.constant 0 : i32
    return %c0_i32, %c0_i32_0 : i32, i32
  }
  func.func @transform_6(%arg0: i32) -> (i32, i32, i32) {
    %c0_i32 = arith.constant 0 : i32
    %c0_i32_0 = arith.constant 0 : i32
    %c0_i32_1 = arith.constant 0 : i32
    %c0_i32_2 = arith.constant 0 : i32
    return %c0_i32, %c0_i32_0, %c0_i32_1 : i32, i32, i32
  }
  func.func @transform_7(%arg0: i32) -> (i32, i32) {
    %c0_i32 = arith.constant 0 : i32
    %c0_i32_0 = arith.constant 0 : i32
    %c0_i32_1 = arith.constant 0 : i32
    return %c0_i32, %c0_i32_0 : i32, i32
  }
  func.func @transform_8(%arg0: i32) -> (i32, i32) {
    %c0_i32 = arith.constant 0 : i32
    %c0_i32_0 = arith.constant 0 : i32
    %c0_i32_1 = arith.constant 0 : i32
    return %c0_i32, %c0_i32_0 : i32, i32
  }
  func.func @transform_9(%arg0: i32) -> (i32, i32) {
    %c0_i32 = arith.constant 0 : i32
    %c0_i32_0 = arith.constant 0 : i32
    %c0_i32_1 = arith.constant 0 : i32
    return %c0_i32, %c0_i32_0 : i32, i32
  }
  func.func @transform_10(%arg0: i32) -> (i32, i32, i32) {
    %c0_i32 = arith.constant 0 : i32
    %c0_i32_0 = arith.constant 0 : i32
    %c0_i32_1 = arith.constant 0 : i32
    %c0_i32_2 = arith.constant 0 : i32
    return %c0_i32, %c0_i32_0, %c0_i32_1 : i32, i32, i32
  }
  func.func @transform_11(%arg0: i32) -> (i32, i32) {
    %c0_i32 = arith.constant 0 : i32
    %c0_i32_0 = arith.constant 0 : i32
    %c0_i32_1 = arith.constant 0 : i32
    return %c0_i32, %c0_i32_0 : i32, i32
  }
  func.func @transform_12(%arg0: i32) -> (i32, i32, i32) {
    %c0_i32 = arith.constant 0 : i32
    %c0_i32_0 = arith.constant 0 : i32
    %c0_i32_1 = arith.constant 0 : i32
    %c0_i32_2 = arith.constant 0 : i32
    return %c0_i32, %c0_i32_0, %c0_i32_1 : i32, i32, i32
  }
  func.func @transform_13(%arg0: i32) -> (i32, i32, i32) {
    %c0_i32 = arith.constant 0 : i32
    %c0_i32_0 = arith.constant 0 : i32
    %c0_i32_1 = arith.constant 0 : i32
    return %arg0, %c0_i32, %c0_i32_0 : i32, i32, i32
  }
}

</mosaic_0001>

<bundles_post_ra>
// kernel: tpu_custom_call.1
= control target key start
LH: loop header
LB: loop body
LE: loop exit
PB: predicated region body
PF: predicated region fallthrough
CT: control target
= control target key end

     0   :  { %s6918_s0 = inlined_call_operand.vmem [shape: f32[2,4,64], index: 0, kind: input, shape index: {}]   ;;  %s6919_s1 = inlined_call_operand.vmem [shape: f32[8,4], index: 1, kind: input, shape index: {}]   ;;  %s6920_s2 = inlined_call_operand.vmem [shape: f32[8,1], index: 2, kind: input, shape index: {}]   ;;  %s6921_s3 = inlined_call_operand.vmem [shape: f32[64,256], index: 3, kind: input, shape index: {}]   ;;  %s6922_s4 = inlined_call_operand.vmem [shape: f32[9,8,8], index: 4, kind: input, shape index: {}]   ;;  %s6923_s5 = inlined_call_operand.vmem [shape: f32[8,1], index: 5, kind: input, shape index: {}]   ;;  %s6924_s6 = inlined_call_operand.vmem [shape: f32[9,1,256], index: 6, kind: input, shape index: {}]   ;;  %s6925_s7 = inlined_call_operand.vmem [shape: f32[8,8], index: 7, kind: input, shape index: {}]   ;;  %s6926_s8 = inlined_call_operand.vmem [shape: f32[8,1], index: 8, kind: input, shape index: {}]   ;;  %s6927_s9 = inlined_call_operand.hbm [shape: f32[256,1024], index: 9, kind: input, shape index: {}]   ;;  %s6928_s10 = inlined_call_operand.vmem [shape: f32[9,8,8], index: 10, kind: input, shape index: {}]   ;;  %s6929_s11 = inlined_call_operand.vmem [shape: f32[8,1], index: 11, kind: input, shape index: {}]   ;;  %s6930_s12 = inlined_call_operand.vmem [shape: f32[9,1,1024], index: 12, kind: input, shape index: {}]   ;;  %s6931_s13 = inlined_call_operand.hbm [shape: f32[2,8,1024], index: 13, kind: output, shape index: {}]  }
   0x1   :  { %6933 = sst [smem:[#allocation15_spill]] %s6918_s0 }
   0x2   :  { %6934 = sst [smem:[#allocation16_spill]] %s6927_s9 }
   0x3   :  { %18 = vsyncpa [#allocation3], 0 }
   0x4   :  { %19 = vsyncpa [#allocation4], 0 }
   0x5   :  { %21 = vsyncpa [#allocation4 + $0x1], 0  ;;  %s5857_s25 = smov 0   ;;  %s5859_s26 = smov 0  }
   0x6   :  { %s5861_s27 = smov 0   ;;  %s5863_s28 = smov 0  }
   0x7 LB: > { %6935 = sst [smem:[#allocation8_spill]] %s5760_s27  ;;  %s5878_s29 = sadd.s32 4294967295, %s5764_s28   ;;  %s5764_s28 = sphi %s5863_s28, %s6959_s28   ;;  %s5760_s27 = sphi %s5861_s27, %s6956_s27   ;;  %s5756_s26 = sphi %s5859_s26, %s6958_s26   ;;  %s5752_s25 = sphi %s5857_s25, %s6957_s25  }
   0x8   : > { %s5503_s30 = sadd.s32 4294967294, %s5764_s28   ;;  %s5882_s14 = sadd.s32 1, %s5764_s28  }
   0x9   : > { %s312_s15 = sadd.s32 1, %s5760_s27  ;;  %s309_s16 = ssub.s32 %s5764_s28, %s5882_s14 }
   0xa   : > { %p322_p0 = scmp.ne.s32.totalorder %s5760_s27, %s5756_s26  ;;  %p310_p1 = scmp.eq.s32.totalorder %s309_s16, 0 }
   0xb   : > { %p323_p2 = scmp.eq.s32.totalorder %s5878_s29, 1  ;;  %p328_p3 = scmp.ne.s32.totalorder %s5756_s26, %s5752_s25 }
   0xc   : > { %p329_p4 = scmp.eq.s32.totalorder %s5503_s30, 1  ;;  %p5504_p7 = scmp.ge.s32.totalorder %s5764_s28, 1 }
   0xd   : > { %s5893_s17 = scalar_select %p310_p1, %s5760_s27, %s312_s15  }
   0xe   : > { %p5895_p5 = por %p323_p2, %p322_p0  ;;  %p5899_p6 = por %p329_p4, %p328_p3 }
   0xf   : > { %6936 = sst [smem:[#allocation9_spill]] %s5893_s17  ;;  %p336_p8 = scmp.lt.s32.totalorder %s5764_s28, 3 }
  0x10   : > { %s6938_s19 = scalar_select %p5899_p6, 1, 0 }
  0x11   : > { %p5617_p9 = scmp.eq.s32.totalorder %s5878_s29, 0  ;;  %p5906_p10 = pnand %p5504_p7, %p336_p8 }
  0x12   : > { %s5766_s21 = smov [#allocation2]  }
  0x13   : > { %s372_s22 = sshll.u32 %s5766_s21, 4  ;;  %p5609_p11 = pneg %p5906_p10  ;;  %s373_s22 = int_to_ptr.vmem [resolvable:$true] %s372_s22 }
  0x14   : > { %s5685_s23 = scalar_lea.vmem %s373_s22, 32768  ;;  %p5693_p3 = scmp.lt.s32.totalorder %s373_s22, %s373_s22 }
  0x15   : > { %p5610_p12 = pnand %p5617_p9, %p5609_p11  ;;  %p5686_p0 = scmp.ne.s32.totalorder %s373_s22, %s5685_s23 }
  0x16   : > { %p5694_p4 = scmp.lt.s32.totalorder %s5685_s23, %s5685_s23 }
  0x17   : > { %p5676_p13 = pneg %p5610_p12 }
  0x18   : > { %p5695_p6 = por %p5694_p4, %p5693_p3 }
  0x19   : > { %p5688_p1 = pnand %p5686_p0, %p5676_p13 }
  0x1b   : > { %p5689_p2 = pneg %p5688_p1 }
  0x1d   : > { %p5696_p7 = pnand %p5695_p6, %p5689_p2 }
  0x1f   : > { %5699 = shalt.err (!%p5696_p7)
}
  0x20   : > { %s5767_s24 = smov 1024   ;;  %s5768_s30 = smov 64  }
  0x21   : > { %s6940_s9 = sld [smem:[#allocation16_spill]] }
  0x23   : > { %404 = sbr.rel (%p5906_p10) target bundleno = 1662 (0x67e), region = 72 }
  0x27   : > { %5612 = dma.hbm_to_vmem [thread:$0]  (!%p5610_p12), %s6940_s9, 32768, %s373_s22, [#allocation3], %s5767_s24, %s5767_s24, %s5768_s30  }
  0x28   : > { %5743 = dma.done.wait (%p5617_p9), [#allocation3], 32768  }
  0x29   : > { %5745 = vsyncadd (%p5617_p9), [#allocation3], 4294934528  ;;  %p447_p8 = scmp.lt.s32.totalorder %s5878_s29, 1  ;;  %v5769_v0 = vmov 0.0   ;;  %vm5770_vm0 = vmmov 0   ;;  %v5771_v1 = vmov 0   ;;  %v632_v30 = vlaneseq }
  0x2a   : > { %5598 = vmatprep.subr.mxu0 %v5769_v0  ;;  %5600 = vmatprep.mubr.msk.f32.mxu0 %vm5770_vm0, %v5769_v0  ;;  %s6941_s0 = sld [smem:[#allocation15_spill]]  ;;  %vm463_vm1 = vcmask 1043456   ;;  %vm459_vm2 = vcmask 31744   ;;  %v452_v3 = vld [vmem:[%s6919_s1] sm:$0xff]  ;;  %v552_v5 = vld [vmem:[%s6921_s3 + $0x78] sm:$0xff]  ;;  %v551_v6 = vld [vmem:[%s6921_s3 + $0x70] sm:$0xff] }
  0x2b   : > { %s448_s21 = scalar_select %p447_p8, %s5878_s29, 1  ;;  %5672 = vset.pattern.permute.xlu0 %v5771_v1  ;;  %621 = vmatprep.mubr.f32.mxu1 %v5769_v0  ;;  %v453_v4 = vld [vmem:[%s6920_s2] sm:$0xff]  ;;  %v550_v7 = vld [vmem:[%s6921_s3 + $0x68] sm:$0xff]  ;;  %v548_v9 = vld [vmem:[%s6921_s3 + $0x58] sm:$0xff]  ;;  %vm553_vm3 = vcmask 523264   ;;  %vm676_vm4 = vcmask 64512  }
  0x2c   : > { %5673 = vset.pattern.permute.xlu1 %v5771_v1  ;;  %456 = vperm.xlu0 %5672, %v453_v4   ;;  %v549_v8 = vld [vmem:[%s6921_s3 + $0x60] sm:$0xff]  ;;  %v547_v10 = vld [vmem:[%s6921_s3 + $0x50] sm:$0xff]  ;;  %v546_v11 = vld [vmem:[%s6921_s3 + $0x48] sm:$0xff]  ;;  %s5772_s27 = smov 17   ;;  %s5773_s17 = smov 16   ;;  %v6002_v31 = vshrl.u32 %v632_v30, 7 }
  0x2d   : > { %s5510_s20 = sshll.u32 %s448_s21, 2  ;;  %573 = vmatprep.subr.mxu1 %v552_v5  ;;  %v545_v12 = vld [vmem:[%s6921_s3 + $0x40] sm:$0xff]  ;;  %v544_v13 = vld [vmem:[%s6921_s3 + $0x38] sm:$0xff]  ;;  %v543_v14 = vld [vmem:[%s6921_s3 + $0x30] sm:$0xff]  ;;  %s5774_s16 = smov 15   ;;  %v6004_v32 = vand.u32 127, %v632_v30 }
  0x2e   : > { %574 = vmatpush1.msra.mxu1 %v551_v6  ;;  %v542_v15 = vld [vmem:[%s6921_s3 + $0x28] sm:$0xff]  ;;  %v541_v16 = vld [vmem:[%s6921_s3 + $0x20] sm:$0xff]  ;;  %v540_v17 = vld [vmem:[%s6921_s3 + $0x18] sm:$0xff]  ;;  %s5776_s23 = smov 127   ;;  %s5778_s30 = smov 112   ;;  %v6007_v33 = vsub.s32 0, %v6002_v31 }
  0x2f   : > { %575 = vmatprep.subr.mxu1 %v550_v7  ;;  %v539_v18 = vld [vmem:[%s6921_s3 + $0x10] sm:$0xff]  ;;  %v538_v19 = vld [vmem:[%s6921_s3 + $0x8] sm:$0xff]  ;;  %v537_v20 = vld [vmem:[%s6921_s3] sm:$0xff]  ;;  %s5779_s9 = smov 111   ;;  %v6010_v34 = vsub.s32 1, %v6002_v31  ;;  %vm634_vm5 = vcmp.lt.s32.totalorder %v6004_v32, 17 }
  0x30   : > { %s450_s24 = scalar_lea.vmem %s6941_s0, %s5510_s20  ;;  %576 = vmatpush1.msra.mxu1 %v549_v8  ;;  %v5524_v27 = vld [vmem:[%s6922_s4 + $0x20] sm:$0xff]  ;;  %s5775_s20 = smov 1   ;;  %vm656_vm6 = vcmp.lt.s32.totalorder %v6004_v32, 16  ;;  %vm829_vm7 = vcmp.lt.s32.totalorder %v6004_v32, 15  ;;  %v5515_v53 = vld [vmem:[%s6922_s4 + $0x8] sm:$0xff]  ;;  %vm929_vm8 = vcmp.lt.s32.totalorder %v6004_v32, 1 }
  0x31   : > { %v451_v2 = vld [vmem:[%s450_s24] sm:$0xf]  ;;  %577 = vmatprep.subr.mxu1 %v548_v9  ;;  %s5777_s24 = smov 113   ;;  %v5518_v41 = vld [vmem:[%s6924_s6 + $0x4] sm:$0x3]  ;;  %vm1107_vm9 = vcmp.lt.s32.totalorder %v6004_v32, 127 }
  0x32   : > { %5599 = vmatpush3.msk.msra.mxu0 %vm463_vm1, %v451_v2  ;;  %578 = vmatpush1.msra.mxu1 %v547_v10  ;;  %v1514_v28 = vld [vmem:[%s6926_s8] sm:$0xff]  ;;  %v842_v52 = vrot.slane %v5518_v41, %v6010_v34  ;;  %v838_v59 = vrot.slane %v5518_v41, %v6007_v33  ;;  %v5526_v2 = vld [vmem:[%s6924_s6 + $0xa] sm:$0x3]  ;;  %vm1207_vm10 = vcmp.lt.s32.totalorder %v6004_v32, 113  ;;  %vm1307_vm11 = vcmp.lt.s32.totalorder %v6004_v32, 112  ;;  %s5782_s21 = smov 33  }
  0x33   : > { %5601 = vmatmul.mubr.msk.f32.vlgmr.msra.gmra.mxu0 %vm459_vm2, %v452_v3  ;;  %579 = vmatprep.subr.mxu1 %v546_v11  ;;  %v1503_v29 = vld [vmem:[%s6923_s5] sm:$0xff]  ;;  %v1120_v10 = vrot.slane %v5526_v2, %v6010_v34  ;;  %v5519_v11 = vld [vmem:[%s6922_s4 + $0x10] sm:$0xff]  ;;  %vm1407_vm12 = vcmp.lt.s32.totalorder %v6004_v32, 111  ;;  %s5783_s22 = smov 31   ;;  %vm2226_vm13 = vcmp.lt.s32.totalorder %v6004_v32, 32  ;;  %vm4292_vm14 = vcmp.lt.s32.totalorder %v6004_v32, 97 }
  0x34   : > { %744 = vmatprep.mubr.f32.mxu0 %v5769_v0  ;;  %580 = vmatpush1.msra.mxu1 %v545_v12  ;;  %v5514_v35 = vld [vmem:[%s6924_s6 + $0x2] sm:$0x3]  ;;  %v637_v38 = vld [vmem:[%s6924_s6] sm:$0x3]  ;;  %v5521_v54 = vld [vmem:[%s6924_s6 + $0x6] sm:$0x3] }
  0x35   : > { %581 = vmatprep.subr.mxu1 %v544_v13  ;;  %v665_v39 = vrot.slane %v5514_v35, %v6007_v33  ;;  %v669_v40 = vrot.slane %v5514_v35, %v6010_v34  ;;  %v642_v42 = vrot.slane %v637_v38, %v6007_v33  ;;  %v646_v43 = vrot.slane %v637_v38, %v6010_v34  ;;  %v651_v1 = vld [vmem:[%s6922_s4] sm:$0xff]  ;;  %v5529_v12 = vld [vmem:[%s6924_s6 + $0xc] sm:$0x3]  ;;  %s444_s15 = sand.u32 1, %s5756_s26  }
  0x36   : > { %582 = vmatpush1.msra.mxu1 %v543_v14  ;;  %v942_v63 = vrot.slane %v5521_v54, %v6010_v34  ;;  %v938_v6 = vrot.slane %v5521_v54, %v6007_v33  ;;  %v5527_v38 = vld [vmem:[%s6922_s4 + $0x28] sm:$0xff]  ;;  %vm2150_vm15 = vcmp.lt.s32.totalorder %v6004_v32, 33  ;;  %vm2878_vm0 = vcmp.lt.s32.totalorder %v6004_v32, 31 }
  0x37   : > { %583 = vmatprep.subr.mxu1 %v542_v15  ;;  %vm4665_vm1 = vcmp.lt.s32.totalorder %v6004_v32, 96  ;;  %vm5038_vm2 = vcmp.lt.s32.totalorder %v6004_v32, 95 }
  0x38   : > { %584 = vmatpush1.msra.mxu1 %v541_v16  ;;  %v1116_v16 = vrot.slane %v5526_v2, %v6007_v33  ;;  %v1682_v2 = vld [vmem:[#allocation2 + $0x2c0] sm:$0xff] }
  0x39   : > { %585 = vmatprep.subr.mxu1 %v540_v17 }
  0x3a   : > { %586 = vmatpush1.msra.mxu1 %v539_v18 }
  0x3b   : > { %587 = vmatprep.subr.mxu1 %v538_v19 }
  0x3c   : > { %588 = vmatpush1.msra.mxu1 %v537_v20  ;;  %v1216_v20 = vrot.slane %v5529_v12, %v6007_v33 }
  0xa7   : > { %v457_v21 = vpop.permute.xlu0 %456 }
  0xf3   : > { %v533_v22 = vpop.f32.mrf.mxu0 }
  0xf4   : > { %v534_v23 = vadd.f32 %v533_v22, %v457_v21  ;;  %v1220_v21 = vrot.slane %v5529_v12, %v6010_v34  ;;  %v5522_v22 = vld [vmem:[%s6922_s4 + $0x18] sm:$0xff]  ;;  %v1642_v12 = vld [vmem:[#allocation2 + $0x180] sm:$0xff] }
  0xf5   : > { %v5602_v24 = vpop.f32.mrf.mxu0 }
  0xf6   : > { %5513 = vmatmul.mubr.msk.f32.vlgmr.msra.gmra.mxu1 %vm553_vm3, %v534_v23  ;;  %v5532_v23 = vld [vmem:[%s6924_s6 + $0xe] sm:$0x3] }
  0xf7   : > { %1094 = vmatprep.mubr.f32.mxu1 %v5769_v0  ;;  %v1316_v35 = vrot.slane %v5532_v23, %v6007_v33 }
 0x1b6   : > { %v623_v25 = vpop.f32.mrf.mxu1 }
 0x1b7   : > { %628 = vrot.lane.b32.xlu1 %v623_v25, %s5772_s27  ;;  %652 = vrot.lane.b32.xlu0 %v623_v25, %s5773_s17 }
 0x1b8   : > { %v625_v26 = vpop.f32.mrf.mxu1 }
 0x1b9   : > { %1060 = vmatprep.subr.mxu1 %v625_v26 }
 0x1ba   : > { %1061 = vmatpush1.msra.mxu1 %v623_v25 }
 0x1bb   : > { %630 = vrot.lane.b32.xlu0 %v625_v26, %s5772_s27  ;;  %654 = vrot.lane.b32.xlu1 %v625_v26, %s5773_s17  ;;  %s5780_s17 = smov 32   ;;  %s5509_s27 = sshll.u32 %s444_s15, 6 }
 0x1bc   : > { %5525 = vmatmul.mubr.msk.f32.vlgmr.msra.gmra.mxu1 %vm676_vm4, %v5524_v27 }
 0x1bd   : > { %1294 = vmatprep.mubr.f32.mxu1 %v5769_v0 }
 0x1bf   : > { %827 = vrot.lane.b32.xlu0 %v625_v26, %s5774_s16  ;;  %825 = vrot.lane.b32.xlu1 %v623_v25, %s5774_s16  ;;  %s5781_s16 = smov 97  }
 0x1c3   : > { %927 = vrot.lane.b32.xlu0 %v625_v26, %s5775_s20  ;;  %925 = vrot.lane.b32.xlu1 %v623_v25, %s5775_s20 }
 0x1c7   : > { %1105 = vrot.lane.b32.xlu0 %v625_v26, %s5776_s23  ;;  %1103 = vrot.lane.b32.xlu1 %v623_v25, %s5776_s23 }
 0x1cb   : > { %1205 = vrot.lane.b32.xlu0 %v625_v26, %s5777_s24  ;;  %1203 = vrot.lane.b32.xlu1 %v623_v25, %s5777_s24  ;;  %s5784_s24 = smov 96  }
 0x1cf   : > { %1305 = vrot.lane.b32.xlu0 %v625_v26, %s5778_s30  ;;  %1303 = vrot.lane.b32.xlu1 %v623_v25, %s5778_s30  ;;  %s5418_s30 = scalar_lea.sflag [#allocation4], %s444_s15 }
 0x1d3   : > { %1405 = vrot.lane.b32.xlu0 %v625_v26, %s5779_s9  ;;  %1403 = vrot.lane.b32.xlu1 %v623_v25, %s5779_s9 }
 0x1d7   : > { %1517 = vperm.xlu0 %5672, %v1514_v28   ;;  %1506 = vperm.xlu1 %5673, %v1503_v29  }
 0x229   : > { %v629_v36 = vpop.permute.xlu1 %628  ;;  %v653_v37 = vpop.permute.xlu0 %652 }
 0x22d   : > { %v631_v44 = vpop.permute.xlu0 %630  ;;  %v655_v45 = vpop.permute.xlu1 %654 }
 0x22e   : > { %v635_v46 = vsel %vm634_vm5, %v629_v36, %v631_v44  ;;  %v657_v47 = vsel %vm656_vm6, %v653_v37, %v655_v45  ;;  %v658_v48 = vsel %vm656_vm6, %v655_v45, %v653_v37  ;;  %v636_v49 = vsel %vm634_vm5, %v631_v44, %v629_v36  ;;  %v5535_v37 = vld [vmem:[%s6924_s6 + $0x10] sm:$0x3] }
 0x22f   : > { %v672_v50 = vmul.f32 %v665_v39, %v658_v48  ;;  %v673_v51 = vmul.f32 %v669_v40, %v657_v47  ;;  %v650_v55 = vmul.f32 %v646_v43, %v635_v46  ;;  %v649_v58 = vmul.f32 %v642_v42, %v636_v49  ;;  %v5530_v39 = vld [vmem:[%s6922_s4 + $0x30] sm:$0xff]  ;;  %v5533_v48 = vld [vmem:[%s6922_s4 + $0x38] sm:$0xff] }
 0x230   : > { %v1320_v36 = vrot.slane %v5532_v23, %v6010_v34  ;;  %v1416_v44 = vrot.slane %v5535_v37, %v6007_v33  ;;  %v1420_v47 = vrot.slane %v5535_v37, %v6010_v34  ;;  %v1595_v23 = vld [vmem:[#allocation2 + $0x8] sm:$0xff] }
 0x231   : > { %v828_v56 = vpop.permute.xlu0 %827  ;;  %710 = vmatprep.subr.mxu0 %v673_v51  ;;  %v826_v57 = vpop.permute.xlu1 %825  ;;  %v1811_v37 = vld [vmem:[#allocation2 + $0x6c8] sm:$0xff] }
 0x232   : > { %v830_v60 = vsel %vm829_vm7, %v826_v57, %v828_v56  ;;  %711 = vmatpush1.msra.mxu0 %v672_v50  ;;  %v831_v61 = vsel %vm829_vm7, %v828_v56, %v826_v57  ;;  %v1715_v56 = vld [vmem:[#allocation2 + $0x3c8] sm:$0xff]  ;;  %v1714_v57 = vld [vmem:[#allocation2 + $0x3c0] sm:$0xff] }
 0x233   : > { %v846_v62 = vmul.f32 %v842_v52, %v830_v60  ;;  %5516 = vmatmul.mubr.msk.f32.vlgmr.msra.gmra.mxu0 %vm676_vm4, %v5515_v53  ;;  %784 = vmatprep.subr.mxu0 %v650_v55  ;;  %v845_v5 = vmul.f32 %v838_v59, %v831_v61  ;;  %v5536_v55 = vld [vmem:[%s6922_s4 + $0x40] sm:$0xff]  ;;  %v1699_v60 = vld [vmem:[#allocation2 + $0x348] sm:$0xff] }
 0x234   : > { %785 = vmatpush1.msra.mxu0 %v649_v58  ;;  %818 = vmatprep.mubr.f32.mxu0 %v5769_v0  ;;  %v1707_v58 = vld [vmem:[#allocation2 + $0x388] sm:$0xff]  ;;  %v1706_v59 = vld [vmem:[#allocation2 + $0x380] sm:$0xff] }
 0x235   : > { %v928_v3 = vpop.permute.xlu0 %927  ;;  %882 = vmatprep.subr.mxu0 %v846_v62  ;;  %v926_v4 = vpop.permute.xlu1 %925  ;;  %v1698_v61 = vld [vmem:[#allocation2 + $0x340] sm:$0xff]  ;;  %v1691_v62 = vld [vmem:[#allocation2 + $0x308] sm:$0xff] }
 0x236   : > { %v930_v7 = vsel %vm929_vm8, %v926_v4, %v928_v3  ;;  %v931_v8 = vsel %vm929_vm8, %v928_v3, %v926_v4  ;;  %v1675_v3 = vld [vmem:[#allocation2 + $0x288] sm:$0xff]  ;;  %v1674_v4 = vld [vmem:[#allocation2 + $0x280] sm:$0xff] }
 0x237   : > { %v946_v9 = vmul.f32 %v942_v63, %v930_v7  ;;  %5517 = vmatmul.mubr.msk.f32.vlgmr.msra.gmra.mxu0 %vm676_vm4, %v651_v1  ;;  %v945_v15 = vmul.f32 %v938_v6, %v931_v8  ;;  %v1690_v63 = vld [vmem:[#allocation2 + $0x300] sm:$0xff]  ;;  %v1683_v1 = vld [vmem:[#allocation2 + $0x2c8] sm:$0xff] }
 0x238   : > { %883 = vmatpush1.msra.mxu0 %v845_v5  ;;  %916 = vmatprep.mubr.f32.mxu0 %v5769_v0  ;;  %v1667_v5 = vld [vmem:[#allocation2 + $0x248] sm:$0xff]  ;;  %v1666_v6 = vld [vmem:[#allocation2 + $0x240] sm:$0xff] }
 0x239   : > { %v1106_v13 = vpop.permute.xlu0 %1105  ;;  %982 = vmatprep.subr.mxu0 %v946_v9  ;;  %v1104_v14 = vpop.permute.xlu1 %1103  ;;  %v1659_v7 = vld [vmem:[#allocation2 + $0x208] sm:$0xff]  ;;  %v1658_v8 = vld [vmem:[#allocation2 + $0x200] sm:$0xff] }
 0x23a   : > { %v1109_v17 = vsel %vm1107_vm9, %v1106_v13, %v1104_v14  ;;  %v1108_v18 = vsel %vm1107_vm9, %v1104_v14, %v1106_v13  ;;  %v1651_v9 = vld [vmem:[#allocation2 + $0x1c8] sm:$0xff]  ;;  %v1634_v14 = vld [vmem:[#allocation2 + $0x140] sm:$0xff] }
 0x23b   : > { %v1124_v19 = vmul.f32 %v1120_v10, %v1109_v17  ;;  %5520 = vmatmul.mubr.msk.f32.vlgmr.msra.gmra.mxu0 %vm676_vm4, %v5519_v11  ;;  %v1123_v26 = vmul.f32 %v1116_v16, %v1108_v18  ;;  %v1650_v10 = vld [vmem:[#allocation2 + $0x1c0] sm:$0xff]  ;;  %v1643_v11 = vld [vmem:[#allocation2 + $0x188] sm:$0xff] }
 0x23c   : > { %983 = vmatpush1.msra.mxu0 %v945_v15  ;;  %1016 = vmatprep.mubr.f32.mxu0 %v5769_v0  ;;  %v1635_v13 = vld [vmem:[#allocation2 + $0x148] sm:$0xff]  ;;  %v1626_v16 = vld [vmem:[#allocation2 + $0x100] sm:$0xff] }
 0x23d   : > { %v1206_v24 = vpop.permute.xlu0 %1205  ;;  %1160 = vmatprep.subr.mxu0 %v1124_v19  ;;  %v1204_v25 = vpop.permute.xlu1 %1203  ;;  %v1627_v15 = vld [vmem:[#allocation2 + $0x108] sm:$0xff]  ;;  %v1618_v18 = vld [vmem:[#allocation2 + $0xc0] sm:$0xff] }
 0x23e   : > { %v1208_v27 = vsel %vm1207_vm10, %v1204_v25, %v1206_v24  ;;  %v1209_v28 = vsel %vm1207_vm10, %v1206_v24, %v1204_v25  ;;  %v1619_v17 = vld [vmem:[#allocation2 + $0xc8] sm:$0xff]  ;;  %v1594_v24 = vld [vmem:[#allocation2] sm:$0xff] }
 0x23f   : > { %v1223_v29 = vmul.f32 %v1216_v20, %v1208_v27  ;;  %v1224_v30 = vmul.f32 %v1220_v21, %v1209_v28  ;;  %5523 = vmatmul.mubr.msk.f32.vlgmr.msra.gmra.mxu0 %vm676_vm4, %v5522_v22  ;;  %v1611_v19 = vld [vmem:[#allocation2 + $0x88] sm:$0xff]  ;;  %v1610_v20 = vld [vmem:[#allocation2 + $0x80] sm:$0xff] }
 0x240   : > { %1161 = vmatpush1.msra.mxu0 %v1123_v26  ;;  %1194 = vmatprep.mubr.f32.mxu0 %v5769_v0  ;;  %v1603_v21 = vld [vmem:[#allocation2 + $0x48] sm:$0xff]  ;;  %v1602_v22 = vld [vmem:[#allocation2 + $0x40] sm:$0xff] }
 0x241   : > { %v1306_v40 = vpop.permute.xlu0 %1305  ;;  %v1304_v41 = vpop.permute.xlu1 %1303  ;;  %1260 = vmatprep.subr.mxu1 %v1224_v30  ;;  %v1843_v25 = vld [vmem:[#allocation2 + $0x7c8] sm:$0xff]  ;;  %v1842_v26 = vld [vmem:[#allocation2 + $0x7c0] sm:$0xff] }
 0x242   : > { %v1308_v42 = vsel %vm1307_vm11, %v1304_v41, %v1306_v40  ;;  %v1309_v43 = vsel %vm1307_vm11, %v1306_v40, %v1304_v41  ;;  %1261 = vmatpush1.msra.mxu1 %v1223_v29  ;;  %v1835_v27 = vld [vmem:[#allocation2 + $0x788] sm:$0xff]  ;;  %v1834_v28 = vld [vmem:[#allocation2 + $0x780] sm:$0xff] }
 0x243   : > { %v1323_v45 = vmul.f32 %v1316_v35, %v1308_v42  ;;  %v1324_v46 = vmul.f32 %v1320_v36, %v1309_v43  ;;  %5528 = vmatmul.mubr.msk.f32.vlgmr.msra.gmra.mxu0 %vm676_vm4, %v5527_v38  ;;  %5531 = vmatmul.mubr.msk.f32.vlgmr.msra.gmra.mxu1 %vm676_vm4, %v5530_v39  ;;  %v1827_v29 = vld [vmem:[#allocation2 + $0x748] sm:$0xff]  ;;  %v1826_v30 = vld [vmem:[#allocation2 + $0x740] sm:$0xff] }
 0x244   : > { %1394 = vmatprep.mubr.f32.mxu0 %v5769_v0  ;;  %1494 = vmatprep.mubr.f32.mxu1 %v5769_v0  ;;  %v1819_v35 = vld [vmem:[#allocation2 + $0x708] sm:$0xff]  ;;  %v1818_v36 = vld [vmem:[#allocation2 + $0x700] sm:$0xff] }
 0x245   : > { %v1406_v49 = vpop.permute.xlu0 %1405  ;;  %1360 = vmatprep.subr.mxu0 %v1324_v46  ;;  %v1404_v50 = vpop.permute.xlu1 %1403  ;;  %v1810_v38 = vld [vmem:[#allocation2 + $0x6c0] sm:$0xff]  ;;  %v1803_v39 = vld [vmem:[#allocation2 + $0x688] sm:$0xff] }
 0x246   : > { %v1408_v51 = vsel %vm1407_vm12, %v1404_v50, %v1406_v49  ;;  %v1409_v52 = vsel %vm1407_vm12, %v1406_v49, %v1404_v50  ;;  %1361 = vmatpush1.msra.mxu0 %v1323_v45  ;;  %v1802_v40 = vld [vmem:[#allocation2 + $0x680] sm:$0xff]  ;;  %v1795_v41 = vld [vmem:[#allocation2 + $0x648] sm:$0xff] }
 0x247   : > { %v1423_v53 = vmul.f32 %v1416_v44, %v1408_v51  ;;  %v1424_v54 = vmul.f32 %v1420_v47, %v1409_v52  ;;  %5534 = vmatmul.mubr.msk.f32.vlgmr.msra.gmra.mxu0 %vm676_vm4, %v5533_v48  ;;  %v1794_v42 = vld [vmem:[#allocation2 + $0x640] sm:$0xff]  ;;  %v1787_v43 = vld [vmem:[#allocation2 + $0x608] sm:$0xff] }
 0x248   : > { %1587 = vmatprep.mubr.f32.mxu0 %v5769_v0  ;;  %v1786_v44 = vld [vmem:[#allocation2 + $0x600] sm:$0xff]  ;;  %v1779_v45 = vld [vmem:[#allocation2 + $0x5c8] sm:$0xff] }
 0x249   : > { %1460 = vmatprep.subr.mxu1 %v1424_v54  ;;  %v1778_v46 = vld [vmem:[#allocation2 + $0x5c0] sm:$0xff]  ;;  %v1771_v47 = vld [vmem:[#allocation2 + $0x588] sm:$0xff] }
 0x24a   : > { %1461 = vmatpush1.msra.mxu1 %v1423_v53  ;;  %v1770_v48 = vld [vmem:[#allocation2 + $0x580] sm:$0xff]  ;;  %v1763_v49 = vld [vmem:[#allocation2 + $0x548] sm:$0xff] }
 0x24b   : > { %5537 = vmatmul.mubr.msk.f32.vlgmr.msra.gmra.mxu1 %vm676_vm4, %v5536_v55  ;;  %1850 = vmatprep.subr.mxu1 %v1715_v56  ;;  %v1762_v50 = vld [vmem:[#allocation2 + $0x540] sm:$0xff]  ;;  %v1755_v51 = vld [vmem:[#allocation2 + $0x508] sm:$0xff] }
 0x24c   : > { %1851 = vmatpush1.msra.mxu1 %v1714_v57  ;;  %v1754_v52 = vld [vmem:[#allocation2 + $0x500] sm:$0xff]  ;;  %v1747_v53 = vld [vmem:[#allocation2 + $0x4c8] sm:$0xff] }
 0x24d   : > { %1852 = vmatprep.subr.mxu1 %v1707_v58  ;;  %v1746_v54 = vld [vmem:[#allocation2 + $0x4c0] sm:$0xff]  ;;  %v1739_v55 = vld [vmem:[#allocation2 + $0x488] sm:$0xff] }
 0x24e   : > { %1853 = vmatpush1.msra.mxu1 %v1706_v59 }
 0x24f   : > { %1854 = vmatprep.subr.mxu1 %v1699_v60 }
 0x250   : > { %1855 = vmatpush1.msra.mxu1 %v1698_v61 }
 0x251   : > { %1856 = vmatprep.subr.mxu1 %v1691_v62 }
 0x252   : > { %1857 = vmatpush1.msra.mxu1 %v1690_v63 }
 0x253   : > { %1858 = vmatprep.subr.mxu1 %v1683_v1 }
 0x254   : > { %1859 = vmatpush1.msra.mxu1 %v1682_v2 }
 0x255   : > { %1860 = vmatprep.subr.mxu1 %v1675_v3 }
 0x256   : > { %1861 = vmatpush1.msra.mxu1 %v1674_v4 }
 0x257   : > { %1862 = vmatprep.subr.mxu1 %v1667_v5 }
 0x258   : > { %1863 = vmatpush1.msra.mxu1 %v1666_v6 }
 0x259   : > { %1864 = vmatprep.subr.mxu1 %v1659_v7 }
 0x25a   : > { %1865 = vmatpush1.msra.mxu1 %v1658_v8 }
 0x25b   : > { %1866 = vmatprep.subr.mxu1 %v1651_v9 }
 0x25c   : > { %1867 = vmatpush1.msra.mxu1 %v1650_v10 }
 0x25d   : > { %1868 = vmatprep.subr.mxu1 %v1643_v11 }
 0x25e   : > { %1869 = vmatpush1.msra.mxu1 %v1642_v12 }
 0x25f   : > { %1870 = vmatprep.subr.mxu1 %v1635_v13 }
 0x260   : > { %1871 = vmatpush1.msra.mxu1 %v1634_v14 }
 0x261   : > { %1872 = vmatprep.subr.mxu1 %v1627_v15 }
 0x262   : > { %1873 = vmatpush1.msra.mxu1 %v1626_v16 }
 0x263   : > { %1874 = vmatprep.subr.mxu1 %v1619_v17 }
 0x264   : > { %1875 = vmatpush1.msra.mxu1 %v1618_v18 }
 0x265   : > { %1876 = vmatprep.subr.mxu1 %v1611_v19 }
 0x266   : > { %1877 = vmatpush1.msra.mxu1 %v1610_v20 }
 0x267   : > { %1878 = vmatprep.subr.mxu1 %v1603_v21 }
 0x268   : > { %1879 = vmatpush1.msra.mxu1 %v1602_v22 }
 0x269   : > { %1880 = vmatprep.subr.mxu1 %v1595_v23 }
 0x26a   : > { %1881 = vmatpush1.msra.mxu1 %v1594_v24 }
 0x26b   : > { %1882 = vmatprep.subr.mxu1 %v1843_v25  ;;  %v1507_v25 = vpop.permute.xlu1 %1506 }
 0x26c   : > { %1883 = vmatpush2.msra.mxu1 %v1842_v26 }
 0x26d   : > { %1884 = vmatprep.subr.mxu1 %v1835_v27 }
 0x26e   : > { %1885 = vmatpush2.msra.mxu1 %v1834_v28 }
 0x26f   : > { %1886 = vmatprep.subr.mxu1 %v1827_v29 }
 0x270   : > { %1887 = vmatpush2.msra.mxu1 %v1826_v30 }
 0x271   : > { %1888 = vmatprep.subr.mxu1 %v1819_v35 }
 0x272   : > { %1889 = vmatpush2.msra.mxu1 %v1818_v36  ;;  %v1513_v36 = vld [vmem:[%s6925_s7] sm:$0xff] }
 0x273   : > { %1890 = vmatprep.subr.mxu1 %v1811_v37  ;;  %v1717_v37 = vld [vmem:[#allocation2 + $0x3d8] sm:$0xff] }
 0x274   : > { %1891 = vmatpush2.msra.mxu1 %v1810_v38  ;;  %v1716_v38 = vld [vmem:[#allocation2 + $0x3d0] sm:$0xff] }
 0x275   : > { %1892 = vmatprep.subr.mxu1 %v1803_v39  ;;  %v1709_v39 = vld [vmem:[#allocation2 + $0x398] sm:$0xff] }
 0x276   : > { %1893 = vmatpush2.msra.mxu1 %v1802_v40  ;;  %v1708_v40 = vld [vmem:[#allocation2 + $0x390] sm:$0xff] }
 0x277   : > { %1894 = vmatprep.subr.mxu1 %v1795_v41  ;;  %v1701_v41 = vld [vmem:[#allocation2 + $0x358] sm:$0xff] }
 0x278   : > { %1895 = vmatpush2.msra.mxu1 %v1794_v42  ;;  %v1700_v42 = vld [vmem:[#allocation2 + $0x350] sm:$0xff] }
 0x279   : > { %1896 = vmatprep.subr.mxu1 %v1787_v43  ;;  %v1693_v43 = vld [vmem:[#allocation2 + $0x318] sm:$0xff] }
 0x27a   : > { %1897 = vmatpush2.msra.mxu1 %v1786_v44  ;;  %v1692_v44 = vld [vmem:[#allocation2 + $0x310] sm:$0xff] }
 0x27b   : > { %1898 = vmatprep.subr.mxu1 %v1779_v45  ;;  %v1685_v45 = vld [vmem:[#allocation2 + $0x2d8] sm:$0xff] }
 0x27c   : > { %1899 = vmatpush2.msra.mxu1 %v1778_v46  ;;  %v1096_v61 = vpop.f32.mrf.mxu1  ;;  %v1684_v46 = vld [vmem:[#allocation2 + $0x2d0] sm:$0xff] }
 0x27d   : > { %1900 = vmatprep.subr.mxu1 %v1771_v47  ;;  %v1677_v47 = vld [vmem:[#allocation2 + $0x298] sm:$0xff] }
 0x27e   : > { %1901 = vmatpush2.msra.mxu1 %v1770_v48  ;;  %v1098_v4 = vpop.f32.mrf.mxu1  ;;  %v1676_v48 = vld [vmem:[#allocation2 + $0x290] sm:$0xff] }
 0x27f   : > { %1902 = vmatprep.subr.mxu1 %v1763_v49  ;;  %v1669_v49 = vld [vmem:[#allocation2 + $0x258] sm:$0xff] }
 0x280   : > { %1903 = vmatpush2.msra.mxu1 %v1762_v50  ;;  %v1668_v50 = vld [vmem:[#allocation2 + $0x250] sm:$0xff] }
 0x281   : > { %1904 = vmatprep.subr.mxu1 %v1755_v51  ;;  %v1661_v51 = vld [vmem:[#allocation2 + $0x218] sm:$0xff] }
 0x282   : > { %1905 = vmatpush2.msra.mxu1 %v1754_v52  ;;  %v1660_v52 = vld [vmem:[#allocation2 + $0x210] sm:$0xff] }
 0x283   : > { %1906 = vmatprep.subr.mxu1 %v1747_v53  ;;  %v1653_v53 = vld [vmem:[#allocation2 + $0x1d8] sm:$0xff] }
 0x284   : > { %1907 = vmatpush2.msra.mxu1 %v1746_v54  ;;  %v1652_v54 = vld [vmem:[#allocation2 + $0x1d0] sm:$0xff] }
 0x285   : > { %1908 = vmatprep.subr.mxu1 %v1739_v55  ;;  %v1645_v55 = vld [vmem:[#allocation2 + $0x198] sm:$0xff] }
 0x2f3   : > { %v746_v56 = vpop.f32.mrf.mxu0 }
 0x2f5   : > { %v748_v57 = vpop.f32.mrf.mxu0 }
 0x2f7   : > { %v820_v58 = vpop.f32.mrf.mxu0 }
 0x2f8   : > { %v821_v62 = vadd.f32 %v820_v58, %v746_v56  ;;  %v1644_v56 = vld [vmem:[#allocation2 + $0x190] sm:$0xff] }
 0x2f9   : > { %v822_v59 = vpop.f32.mrf.mxu0  ;;  %v1636_v58 = vld [vmem:[#allocation2 + $0x150] sm:$0xff] }
 0x2fa   : > { %v823_v1 = vadd.f32 %v822_v59, %v748_v57  ;;  %v1637_v57 = vld [vmem:[#allocation2 + $0x158] sm:$0xff] }
 0x2fb   : > { %v918_v60 = vpop.f32.mrf.mxu0  ;;  %v1629_v59 = vld [vmem:[#allocation2 + $0x118] sm:$0xff] }
 0x2fc   : > { %v923_v2 = vadd.f32 %v918_v60, %v821_v62  ;;  %v1628_v60 = vld [vmem:[#allocation2 + $0x110] sm:$0xff] }
 0x2fd   : > { %v920_v63 = vpop.f32.mrf.mxu0  ;;  %v1620_v62 = vld [vmem:[#allocation2 + $0xd0] sm:$0xff] }
 0x2fe   : > { %v924_v5 = vadd.f32 %v920_v63, %v823_v1  ;;  %v1613_v63 = vld [vmem:[#allocation2 + $0x98] sm:$0xff]  ;;  %v1612_v1 = vld [vmem:[#allocation2 + $0x90] sm:$0xff] }
 0x2ff   : > { %v1018_v3 = vpop.f32.mrf.mxu0 }
 0x300   : > { %v1023_v6 = vadd.f32 %v1018_v3, %v923_v2  ;;  %v1605_v2 = vld [vmem:[#allocation2 + $0x58] sm:$0xff]  ;;  %v1604_v3 = vld [vmem:[#allocation2 + $0x50] sm:$0xff] }
 0x301   : > { %v1020_v7 = vpop.f32.mrf.mxu0 }
 0x302   : > { %v1024_v8 = vadd.f32 %v1020_v7, %v924_v5  ;;  %v1101_v9 = vadd.f32 %v1096_v61, %v1023_v6  ;;  %v1621_v61 = vld [vmem:[#allocation2 + $0xd8] sm:$0xff]  ;;  %v1596_v5 = vld [vmem:[#allocation2 + $0x10] sm:$0xff] }
 0x303   : > { %v1196_v10 = vpop.f32.mrf.mxu0  ;;  %v1296_v11 = vpop.f32.mrf.mxu1  ;;  %v1845_v6 = vld [vmem:[#allocation2 + $0x7d8] sm:$0xff]  ;;  %v1844_v7 = vld [vmem:[#allocation2 + $0x7d0] sm:$0xff] }
 0x304   : > { %v1102_v12 = vadd.f32 %v1098_v4, %v1024_v8  ;;  %v1201_v13 = vadd.f32 %v1196_v10, %v1101_v9  ;;  %v1597_v4 = vld [vmem:[#allocation2 + $0x18] sm:$0xff]  ;;  %v1836_v9 = vld [vmem:[#allocation2 + $0x790] sm:$0xff] }
 0x305   : > { %v1198_v14 = vpop.f32.mrf.mxu0  ;;  %v1298_v15 = vpop.f32.mrf.mxu1  ;;  %v1837_v8 = vld [vmem:[#allocation2 + $0x798] sm:$0xff] }
 0x306   : > { %v1202_v16 = vadd.f32 %v1198_v14, %v1102_v12  ;;  %v1301_v17 = vadd.f32 %v1296_v11, %v1201_v13  ;;  %v1829_v10 = vld [vmem:[#allocation2 + $0x758] sm:$0xff]  ;;  %v1828_v11 = vld [vmem:[#allocation2 + $0x750] sm:$0xff] }
 0x307   : > { %v1396_v18 = vpop.f32.mrf.mxu0  ;;  %v1821_v12 = vld [vmem:[#allocation2 + $0x718] sm:$0xff]  ;;  %v1820_v13 = vld [vmem:[#allocation2 + $0x710] sm:$0xff] }
 0x308   : > { %v1302_v19 = vadd.f32 %v1298_v15, %v1202_v16  ;;  %v1401_v21 = vadd.f32 %v1396_v18, %v1301_v17  ;;  %v1813_v14 = vld [vmem:[#allocation2 + $0x6d8] sm:$0xff]  ;;  %v1812_v15 = vld [vmem:[#allocation2 + $0x6d0] sm:$0xff] }
 0x309   : > { %v1398_v20 = vpop.f32.mrf.mxu0  ;;  %v1805_v16 = vld [vmem:[#allocation2 + $0x698] sm:$0xff]  ;;  %v1804_v17 = vld [vmem:[#allocation2 + $0x690] sm:$0xff] }
 0x30a   : > { %v1402_v23 = vadd.f32 %v1398_v20, %v1302_v19  ;;  %v1797_v18 = vld [vmem:[#allocation2 + $0x658] sm:$0xff]  ;;  %v1796_v19 = vld [vmem:[#allocation2 + $0x650] sm:$0xff] }
 0x30b   : > { %v1496_v22 = vpop.f32.mrf.mxu1  ;;  %v1789_v20 = vld [vmem:[#allocation2 + $0x618] sm:$0xff] }
 0x30c   : > { %v1501_v24 = vadd.f32 %v1496_v22, %v1401_v21  ;;  %v1788_v21 = vld [vmem:[#allocation2 + $0x610] sm:$0xff]  ;;  %v1781_v22 = vld [vmem:[#allocation2 + $0x5d8] sm:$0xff] }
 0x30d   : > { %v1498_v26 = vpop.f32.mrf.mxu1 }
 0x30e   : > { %v1502_v27 = vadd.f32 %v1498_v26, %v1402_v23  ;;  %v1509_v28 = vadd.f32 %v1507_v25, %v1501_v24  ;;  %v1780_v23 = vld [vmem:[#allocation2 + $0x5d0] sm:$0xff]  ;;  %v1773_v24 = vld [vmem:[#allocation2 + $0x598] sm:$0xff] }
 0x30f   : > { %v1765_v26 = vld [vmem:[#allocation2 + $0x558] sm:$0xff] }
 0x310   : > { %v1510_v29 = vadd.f32 %v1507_v25, %v1502_v27  ;;  %v1511_v35 = vmax.f32 %v1509_v28, 0.0  ;;  %v1772_v25 = vld [vmem:[#allocation2 + $0x590] sm:$0xff]  ;;  %v1757_v28 = vld [vmem:[#allocation2 + $0x518] sm:$0xff] }
 0x311   : > { %v1764_v27 = vld [vmem:[#allocation2 + $0x550] sm:$0xff] }
 0x312   : > { %v1512_v30 = vmax.f32 %v1510_v29, 0.0  ;;  %v1756_v29 = vld [vmem:[#allocation2 + $0x510] sm:$0xff] }
 0x314   : > { %1553 = vmatprep.subr.mxu0 %v1512_v30  ;;  %v1749_v30 = vld [vmem:[#allocation2 + $0x4d8] sm:$0xff] }
 0x315   : > { %1554 = vmatpush1.msra.mxu0 %v1511_v35  ;;  %v1748_v35 = vld [vmem:[#allocation2 + $0x4d0] sm:$0xff] }
 0x316   : > { %5538 = vmatmul.mubr.msk.f32.vlgmr.msra.gmra.mxu0 %vm676_vm4, %v1513_v36  ;;  %1921 = vmatprep.subr.mxu0 %v1717_v37  ;;  %v1741_v36 = vld [vmem:[#allocation2 + $0x498] sm:$0xff]  ;;  %v1738_v37 = vld [vmem:[#allocation2 + $0x480] sm:$0xff] }
 0x317   : > { %1922 = vmatpush1.msra.mxu0 %v1716_v38  ;;  %v1740_v38 = vld [vmem:[#allocation2 + $0x490] sm:$0xff]  ;;  %1909 = vmatpush2.msra.mxu1 %v1738_v37  ;;  %v1631_v37 = vld [vmem:[#allocation2 + $0x128] sm:$0xff] }
 0x318   : > { %1923 = vmatprep.subr.mxu0 %v1709_v39  ;;  %v1731_v39 = vld [vmem:[#allocation2 + $0x448] sm:$0xff] }
 0x319   : > { %1924 = vmatpush1.msra.mxu0 %v1708_v40  ;;  %v1733_v40 = vld [vmem:[#allocation2 + $0x458] sm:$0xff]  ;;  %1910 = vmatprep.subr.mxu1 %v1731_v39  ;;  %v1630_v39 = vld [vmem:[#allocation2 + $0x120] sm:$0xff] }
 0x31a   : > { %1925 = vmatprep.subr.mxu0 %v1701_v41  ;;  %v1730_v41 = vld [vmem:[#allocation2 + $0x440] sm:$0xff] }
 0x31b   : > { %1926 = vmatpush1.msra.mxu0 %v1700_v42  ;;  %v1732_v42 = vld [vmem:[#allocation2 + $0x450] sm:$0xff]  ;;  %1911 = vmatpush2.msra.mxu1 %v1730_v41  ;;  %v1623_v41 = vld [vmem:[#allocation2 + $0xe8] sm:$0xff] }
 0x31c   : > { %1927 = vmatprep.subr.mxu0 %v1693_v43  ;;  %v1723_v43 = vld [vmem:[#allocation2 + $0x408] sm:$0xff] }
 0x31d   : > { %1928 = vmatpush1.msra.mxu0 %v1692_v44  ;;  %v1725_v44 = vld [vmem:[#allocation2 + $0x418] sm:$0xff]  ;;  %1912 = vmatprep.subr.mxu1 %v1723_v43  ;;  %v1622_v43 = vld [vmem:[#allocation2 + $0xe0] sm:$0xff] }
 0x31e   : > { %1929 = vmatprep.subr.mxu0 %v1685_v45  ;;  %v1722_v45 = vld [vmem:[#allocation2 + $0x400] sm:$0xff] }
 0x31f   : > { %1930 = vmatpush1.msra.mxu0 %v1684_v46  ;;  %v1724_v46 = vld [vmem:[#allocation2 + $0x410] sm:$0xff]  ;;  %1913 = vmatpush2.msra.mxu1 %v1722_v45  ;;  %v1615_v45 = vld [vmem:[#allocation2 + $0xa8] sm:$0xff] }
 0x320   : > { %1931 = vmatprep.subr.mxu0 %v1677_v47  ;;  %v1719_v47 = vld [vmem:[#allocation2 + $0x3e8] sm:$0xff] }
 0x321   : > { %1932 = vmatpush1.msra.mxu0 %v1676_v48  ;;  %v1721_v48 = vld [vmem:[#allocation2 + $0x3f8] sm:$0xff]  ;;  %1992 = vmatprep.subr.mxu1 %v1719_v47  ;;  %v1614_v47 = vld [vmem:[#allocation2 + $0xa0] sm:$0xff] }
 0x322   : > { %1933 = vmatprep.subr.mxu0 %v1669_v49 }
 0x323   : > { %1934 = vmatpush1.msra.mxu0 %v1668_v50  ;;  %v1518_v50 = vpop.permute.xlu0 %1517 }
 0x324   : > { %1935 = vmatprep.subr.mxu0 %v1661_v51 }
 0x325   : > { %1936 = vmatpush1.msra.mxu0 %v1660_v52 }
 0x326   : > { %1937 = vmatprep.subr.mxu0 %v1653_v53 }
 0x327   : > { %1938 = vmatpush1.msra.mxu0 %v1652_v54  ;;  %v1718_v54 = vld [vmem:[#allocation2 + $0x3e0] sm:$0xff] }
 0x328   : > { %1939 = vmatprep.subr.mxu0 %v1645_v55  ;;  %v1720_v55 = vld [vmem:[#allocation2 + $0x3f0] sm:$0xff] }
 0x329   : > { %1940 = vmatpush1.msra.mxu0 %v1644_v56  ;;  %v1711_v56 = vld [vmem:[#allocation2 + $0x3a8] sm:$0xff] }
 0x32a   : > { %1941 = vmatprep.subr.mxu0 %v1637_v57  ;;  %v1713_v57 = vld [vmem:[#allocation2 + $0x3b8] sm:$0xff] }
 0x32b   : > { %1942 = vmatpush1.msra.mxu0 %v1636_v58  ;;  %v1710_v58 = vld [vmem:[#allocation2 + $0x3a0] sm:$0xff] }
 0x32c   : > { %1943 = vmatprep.subr.mxu0 %v1629_v59  ;;  %v1712_v59 = vld [vmem:[#allocation2 + $0x3b0] sm:$0xff] }
 0x32d   : > { %1944 = vmatpush1.msra.mxu0 %v1628_v60  ;;  %v1703_v60 = vld [vmem:[#allocation2 + $0x368] sm:$0xff] }
 0x32e   : > { %1945 = vmatprep.subr.mxu0 %v1621_v61  ;;  %v1705_v61 = vld [vmem:[#allocation2 + $0x378] sm:$0xff] }
 0x32f   : > { %1946 = vmatpush1.msra.mxu0 %v1620_v62  ;;  %v1702_v62 = vld [vmem:[#allocation2 + $0x360] sm:$0xff] }
 0x330   : > { %1947 = vmatprep.subr.mxu0 %v1613_v63  ;;  %v1704_v63 = vld [vmem:[#allocation2 + $0x370] sm:$0xff] }
 0x331   : > { %1948 = vmatpush1.msra.mxu0 %v1612_v1  ;;  %v1695_v1 = vld [vmem:[#allocation2 + $0x328] sm:$0xff] }
 0x332   : > { %1949 = vmatprep.subr.mxu0 %v1605_v2  ;;  %v1697_v2 = vld [vmem:[#allocation2 + $0x338] sm:$0xff] }
 0x333   : > { %1950 = vmatpush1.msra.mxu0 %v1604_v3  ;;  %v1694_v3 = vld [vmem:[#allocation2 + $0x320] sm:$0xff] }
 0x334   : > { %1951 = vmatprep.subr.mxu0 %v1597_v4  ;;  %v1696_v4 = vld [vmem:[#allocation2 + $0x330] sm:$0xff] }
 0x335   : > { %1952 = vmatpush1.msra.mxu0 %v1596_v5  ;;  %v1687_v5 = vld [vmem:[#allocation2 + $0x2e8] sm:$0xff] }
 0x336   : > { %1953 = vmatprep.subr.mxu0 %v1845_v6  ;;  %v1689_v6 = vld [vmem:[#allocation2 + $0x2f8] sm:$0xff] }
 0x337   : > { %1954 = vmatpush2.msra.mxu0 %v1844_v7  ;;  %v1686_v7 = vld [vmem:[#allocation2 + $0x2e0] sm:$0xff] }
 0x338   : > { %1955 = vmatprep.subr.mxu0 %v1837_v8  ;;  %v1688_v8 = vld [vmem:[#allocation2 + $0x2f0] sm:$0xff] }
 0x339   : > { %1956 = vmatpush2.msra.mxu0 %v1836_v9  ;;  %v1679_v9 = vld [vmem:[#allocation2 + $0x2a8] sm:$0xff] }
 0x33a   : > { %1957 = vmatprep.subr.mxu0 %v1829_v10  ;;  %v1681_v10 = vld [vmem:[#allocation2 + $0x2b8] sm:$0xff] }
 0x33b   : > { %1958 = vmatpush2.msra.mxu0 %v1828_v11  ;;  %v1678_v11 = vld [vmem:[#allocation2 + $0x2a0] sm:$0xff] }
 0x33c   : > { %1959 = vmatprep.subr.mxu0 %v1821_v12  ;;  %v1680_v12 = vld [vmem:[#allocation2 + $0x2b0] sm:$0xff] }
 0x33d   : > { %1960 = vmatpush2.msra.mxu0 %v1820_v13  ;;  %v1671_v13 = vld [vmem:[#allocation2 + $0x268] sm:$0xff] }
 0x33e   : > { %1961 = vmatprep.subr.mxu0 %v1813_v14  ;;  %v1673_v14 = vld [vmem:[#allocation2 + $0x278] sm:$0xff] }
 0x33f   : > { %1962 = vmatpush2.msra.mxu0 %v1812_v15  ;;  %v1670_v15 = vld [vmem:[#allocation2 + $0x260] sm:$0xff] }
 0x340   : > { %1963 = vmatprep.subr.mxu0 %v1805_v16  ;;  %v1672_v16 = vld [vmem:[#allocation2 + $0x270] sm:$0xff] }
 0x341   : > { %1964 = vmatpush2.msra.mxu0 %v1804_v17  ;;  %v1663_v17 = vld [vmem:[#allocation2 + $0x228] sm:$0xff] }
 0x342   : > { %1965 = vmatprep.subr.mxu0 %v1797_v18  ;;  %v1665_v18 = vld [vmem:[#allocation2 + $0x238] sm:$0xff] }
 0x343   : > { %1966 = vmatpush2.msra.mxu0 %v1796_v19  ;;  %v1662_v19 = vld [vmem:[#allocation2 + $0x220] sm:$0xff] }
 0x344   : > { %1967 = vmatprep.subr.mxu0 %v1789_v20  ;;  %v1664_v20 = vld [vmem:[#allocation2 + $0x230] sm:$0xff] }
 0x345   : > { %1968 = vmatpush2.msra.mxu0 %v1788_v21  ;;  %v1655_v21 = vld [vmem:[#allocation2 + $0x1e8] sm:$0xff] }
 0x346   : > { %1969 = vmatprep.subr.mxu0 %v1781_v22  ;;  %v1657_v22 = vld [vmem:[#allocation2 + $0x1f8] sm:$0xff] }
 0x347   : > { %1970 = vmatpush2.msra.mxu0 %v1780_v23  ;;  %v1654_v23 = vld [vmem:[#allocation2 + $0x1e0] sm:$0xff] }
 0x348   : > { %1971 = vmatprep.subr.mxu0 %v1773_v24  ;;  %v1656_v24 = vld [vmem:[#allocation2 + $0x1f0] sm:$0xff] }
 0x349   : > { %1972 = vmatpush2.msra.mxu0 %v1772_v25  ;;  %v1647_v25 = vld [vmem:[#allocation2 + $0x1a8] sm:$0xff] }
 0x34a   : > { %1973 = vmatprep.subr.mxu0 %v1765_v26  ;;  %v1649_v26 = vld [vmem:[#allocation2 + $0x1b8] sm:$0xff] }
 0x34b   : > { %1974 = vmatpush2.msra.mxu0 %v1764_v27  ;;  %v1646_v27 = vld [vmem:[#allocation2 + $0x1a0] sm:$0xff] }
 0x34c   : > { %1975 = vmatprep.subr.mxu0 %v1757_v28  ;;  %v1648_v28 = vld [vmem:[#allocation2 + $0x1b0] sm:$0xff] }
 0x34d   : > { %1976 = vmatpush2.msra.mxu0 %v1756_v29  ;;  %v1639_v29 = vld [vmem:[#allocation2 + $0x168] sm:$0xff] }
 0x34e   : > { %1977 = vmatprep.subr.mxu0 %v1749_v30  ;;  %v1641_v30 = vld [vmem:[#allocation2 + $0x178] sm:$0xff] }
 0x34f   : > { %1978 = vmatpush2.msra.mxu0 %v1748_v35  ;;  %v1638_v35 = vld [vmem:[#allocation2 + $0x160] sm:$0xff] }
 0x350   : > { %1979 = vmatprep.subr.mxu0 %v1741_v36  ;;  %v1640_v36 = vld [vmem:[#allocation2 + $0x170] sm:$0xff] }
 0x351   : > { %1980 = vmatpush2.msra.mxu0 %v1740_v38  ;;  %v1633_v38 = vld [vmem:[#allocation2 + $0x138] sm:$0xff] }
 0x352   : > { %1981 = vmatprep.subr.mxu0 %v1733_v40  ;;  %v1632_v40 = vld [vmem:[#allocation2 + $0x130] sm:$0xff] }
 0x353   : > { %1982 = vmatpush2.msra.mxu0 %v1732_v42  ;;  %v1625_v42 = vld [vmem:[#allocation2 + $0xf8] sm:$0xff] }
 0x354   : > { %1983 = vmatprep.subr.mxu0 %v1725_v44  ;;  %v1624_v44 = vld [vmem:[#allocation2 + $0xf0] sm:$0xff] }
 0x355   : > { %1984 = vmatpush2.msra.mxu0 %v1724_v46  ;;  %v1617_v46 = vld [vmem:[#allocation2 + $0xb8] sm:$0xff] }
 0x356   : > { %2063 = vmatprep.subr.mxu0 %v1721_v48  ;;  %v1616_v48 = vld [vmem:[#allocation2 + $0xb0] sm:$0xff] }
 0x3d6   : > { %v1589_v49 = vpop.f32.mrf.mxu0 }
 0x3d7   : > { %v6111_v53 = vadd.f32 %v1589_v49, %v1518_v50  ;;  %v1607_v49 = vld [vmem:[#allocation2 + $0x68] sm:$0xff] }
 0x3d8   : > { %v1591_v51 = vpop.f32.mrf.mxu0 }
 0x3d9   : > { %v1592_v52 = vadd.f32 %v1591_v51, %v1518_v50  ;;  %v1609_v50 = vld [vmem:[#allocation2 + $0x78] sm:$0xff]  ;;  %v1606_v51 = vld [vmem:[#allocation2 + $0x60] sm:$0xff] }
 0x3db   : > { %1914 = vmatprep.mubr.f32.mxu1 %v1592_v52  ;;  %1985 = vmatprep.mubr.f32.mxu0 %v1592_v52 }
 0x3dc   : > { %1915 = vmatmul.mubr.f32.vlgmr.msra.gmra.mxu1 %v6111_v53  ;;  %1986 = vmatmul.mubr.f32.vlgmr.msra.gmra.mxu0 %v6111_v53 }
 0x3dd   : > { %1993 = vmatpush1.msra.mxu1 %v1718_v54  ;;  %2064 = vmatpush1.msra.mxu0 %v1720_v55  ;;  %v1599_v54 = vld [vmem:[#allocation2 + $0x28] sm:$0xff]  ;;  %v1601_v55 = vld [vmem:[#allocation2 + $0x38] sm:$0xff] }
 0x3de   : > { %1994 = vmatprep.subr.mxu1 %v1711_v56  ;;  %2056 = vmatprep.mubr.f32.mxu1 %v1592_v52  ;;  %v1598_v56 = vld [vmem:[#allocation2 + $0x20] sm:$0xff] }
 0x3df   : > { %2065 = vmatprep.subr.mxu0 %v1713_v57  ;;  %2127 = vmatprep.mubr.f32.mxu0 %v1592_v52  ;;  %v1608_v52 = vld [vmem:[#allocation2 + $0x70] sm:$0xff] }
 0x3e0   : > { %1995 = vmatpush1.msra.mxu1 %v1710_v58  ;;  %2066 = vmatpush1.msra.mxu0 %v1712_v59  ;;  %v1600_v57 = vld [vmem:[#allocation2 + $0x30] sm:$0xff]  ;;  %v1847_v58 = vld [vmem:[#allocation2 + $0x7e8] sm:$0xff]  ;;  %v1849_v59 = vld [vmem:[#allocation2 + $0x7f8] sm:$0xff] }
 0x3e1   : > { %1996 = vmatprep.subr.mxu1 %v1703_v60  ;;  %2067 = vmatprep.subr.mxu0 %v1705_v61  ;;  %v1846_v60 = vld [vmem:[#allocation2 + $0x7e0] sm:$0xff]  ;;  %v1848_v61 = vld [vmem:[#allocation2 + $0x7f0] sm:$0xff] }
 0x3e2   : > { %1997 = vmatpush1.msra.mxu1 %v1702_v62  ;;  %2068 = vmatpush1.msra.mxu0 %v1704_v63  ;;  %v1839_v62 = vld [vmem:[#allocation2 + $0x7a8] sm:$0xff]  ;;  %v1841_v63 = vld [vmem:[#allocation2 + $0x7b8] sm:$0xff] }
 0x3e3   : > { %1998 = vmatprep.subr.mxu1 %v1695_v1  ;;  %2069 = vmatprep.subr.mxu0 %v1697_v2  ;;  %v1838_v1 = vld [vmem:[#allocation2 + $0x7a0] sm:$0xff]  ;;  %v1840_v2 = vld [vmem:[#allocation2 + $0x7b0] sm:$0xff] }
 0x3e4   : > { %1999 = vmatpush1.msra.mxu1 %v1694_v3  ;;  %2070 = vmatpush1.msra.mxu0 %v1696_v4  ;;  %v1831_v3 = vld [vmem:[#allocation2 + $0x768] sm:$0xff]  ;;  %v1833_v4 = vld [vmem:[#allocation2 + $0x778] sm:$0xff] }
 0x3e5   : > { %2000 = vmatprep.subr.mxu1 %v1687_v5  ;;  %2071 = vmatprep.subr.mxu0 %v1689_v6  ;;  %v1830_v5 = vld [vmem:[#allocation2 + $0x760] sm:$0xff]  ;;  %v1832_v6 = vld [vmem:[#allocation2 + $0x770] sm:$0xff] }
 0x3e6   : > { %2001 = vmatpush1.msra.mxu1 %v1686_v7  ;;  %2072 = vmatpush1.msra.mxu0 %v1688_v8  ;;  %v1823_v7 = vld [vmem:[#allocation2 + $0x728] sm:$0xff]  ;;  %v1825_v8 = vld [vmem:[#allocation2 + $0x738] sm:$0xff] }
 0x3e7   : > { %2002 = vmatprep.subr.mxu1 %v1679_v9  ;;  %2073 = vmatprep.subr.mxu0 %v1681_v10  ;;  %v1822_v9 = vld [vmem:[#allocation2 + $0x720] sm:$0xff]  ;;  %v1824_v10 = vld [vmem:[#allocation2 + $0x730] sm:$0xff] }
 0x3e8   : > { %2003 = vmatpush1.msra.mxu1 %v1678_v11  ;;  %2074 = vmatpush1.msra.mxu0 %v1680_v12  ;;  %v1815_v11 = vld [vmem:[#allocation2 + $0x6e8] sm:$0xff]  ;;  %v1817_v12 = vld [vmem:[#allocation2 + $0x6f8] sm:$0xff] }
 0x3e9   : > { %2004 = vmatprep.subr.mxu1 %v1671_v13  ;;  %2075 = vmatprep.subr.mxu0 %v1673_v14  ;;  %v1814_v13 = vld [vmem:[#allocation2 + $0x6e0] sm:$0xff]  ;;  %v1816_v14 = vld [vmem:[#allocation2 + $0x6f0] sm:$0xff] }
 0x3ea   : > { %2005 = vmatpush1.msra.mxu1 %v1670_v15  ;;  %2076 = vmatpush1.msra.mxu0 %v1672_v16  ;;  %v1807_v15 = vld [vmem:[#allocation2 + $0x6a8] sm:$0xff]  ;;  %v1809_v16 = vld [vmem:[#allocation2 + $0x6b8] sm:$0xff] }
 0x3eb   : > { %2006 = vmatprep.subr.mxu1 %v1663_v17  ;;  %2077 = vmatprep.subr.mxu0 %v1665_v18  ;;  %v1806_v17 = vld [vmem:[#allocation2 + $0x6a0] sm:$0xff]  ;;  %v1808_v18 = vld [vmem:[#allocation2 + $0x6b0] sm:$0xff] }
 0x3ec   : > { %2007 = vmatpush1.msra.mxu1 %v1662_v19  ;;  %2078 = vmatpush1.msra.mxu0 %v1664_v20  ;;  %v1799_v19 = vld [vmem:[#allocation2 + $0x668] sm:$0xff]  ;;  %v1801_v20 = vld [vmem:[#allocation2 + $0x678] sm:$0xff] }
 0x3ed   : > { %2008 = vmatprep.subr.mxu1 %v1655_v21  ;;  %2079 = vmatprep.subr.mxu0 %v1657_v22  ;;  %v1798_v21 = vld [vmem:[#allocation2 + $0x660] sm:$0xff]  ;;  %v1800_v22 = vld [vmem:[#allocation2 + $0x670] sm:$0xff] }
 0x3ee   : > { %2009 = vmatpush1.msra.mxu1 %v1654_v23  ;;  %2080 = vmatpush1.msra.mxu0 %v1656_v24  ;;  %v1791_v23 = vld [vmem:[#allocation2 + $0x628] sm:$0xff]  ;;  %v1793_v24 = vld [vmem:[#allocation2 + $0x638] sm:$0xff] }
 0x3ef   : > { %2010 = vmatprep.subr.mxu1 %v1647_v25  ;;  %2081 = vmatprep.subr.mxu0 %v1649_v26  ;;  %v1790_v25 = vld [vmem:[#allocation2 + $0x620] sm:$0xff]  ;;  %v1792_v26 = vld [vmem:[#allocation2 + $0x630] sm:$0xff] }
 0x3f0   : > { %2011 = vmatpush1.msra.mxu1 %v1646_v27  ;;  %2082 = vmatpush1.msra.mxu0 %v1648_v28  ;;  %v1783_v27 = vld [vmem:[#allocation2 + $0x5e8] sm:$0xff]  ;;  %v1785_v28 = vld [vmem:[#allocation2 + $0x5f8] sm:$0xff] }
 0x3f1   : > { %2012 = vmatprep.subr.mxu1 %v1639_v29  ;;  %2083 = vmatprep.subr.mxu0 %v1641_v30  ;;  %v1782_v29 = vld [vmem:[#allocation2 + $0x5e0] sm:$0xff]  ;;  %v1784_v30 = vld [vmem:[#allocation2 + $0x5f0] sm:$0xff] }
 0x3f2   : > { %2013 = vmatpush1.msra.mxu1 %v1638_v35  ;;  %2084 = vmatpush1.msra.mxu0 %v1640_v36  ;;  %v1775_v35 = vld [vmem:[#allocation2 + $0x5a8] sm:$0xff]  ;;  %v1777_v36 = vld [vmem:[#allocation2 + $0x5b8] sm:$0xff] }
 0x3f3   : > { %2014 = vmatprep.subr.mxu1 %v1631_v37  ;;  %2085 = vmatprep.subr.mxu0 %v1633_v38  ;;  %v1774_v37 = vld [vmem:[#allocation2 + $0x5a0] sm:$0xff]  ;;  %v1776_v38 = vld [vmem:[#allocation2 + $0x5b0] sm:$0xff] }
 0x3f4   : > { %2015 = vmatpush1.msra.mxu1 %v1630_v39  ;;  %2086 = vmatpush1.msra.mxu0 %v1632_v40  ;;  %v1767_v39 = vld [vmem:[#allocation2 + $0x568] sm:$0xff]  ;;  %v1769_v40 = vld [vmem:[#allocation2 + $0x578] sm:$0xff] }
 0x3f5   : > { %2016 = vmatprep.subr.mxu1 %v1623_v41  ;;  %2087 = vmatprep.subr.mxu0 %v1625_v42  ;;  %v1766_v41 = vld [vmem:[#allocation2 + $0x560] sm:$0xff]  ;;  %v1768_v42 = vld [vmem:[#allocation2 + $0x570] sm:$0xff] }
 0x3f6   : > { %2017 = vmatpush1.msra.mxu1 %v1622_v43  ;;  %2088 = vmatpush1.msra.mxu0 %v1624_v44  ;;  %v1759_v43 = vld [vmem:[#allocation2 + $0x528] sm:$0xff]  ;;  %v1761_v44 = vld [vmem:[#allocation2 + $0x538] sm:$0xff] }
 0x3f7   : > { %2018 = vmatprep.subr.mxu1 %v1615_v45  ;;  %2089 = vmatprep.subr.mxu0 %v1617_v46  ;;  %v1758_v45 = vld [vmem:[#allocation2 + $0x520] sm:$0xff]  ;;  %v1760_v46 = vld [vmem:[#allocation2 + $0x530] sm:$0xff] }
 0x3f8   : > { %2019 = vmatpush1.msra.mxu1 %v1614_v47  ;;  %2090 = vmatpush1.msra.mxu0 %v1616_v48  ;;  %v1751_v47 = vld [vmem:[#allocation2 + $0x4e8] sm:$0xff]  ;;  %v1753_v48 = vld [vmem:[#allocation2 + $0x4f8] sm:$0xff] }
 0x3f9   : > { %2020 = vmatprep.subr.mxu1 %v1607_v49  ;;  %2091 = vmatprep.subr.mxu0 %v1609_v50  ;;  %v1750_v49 = vld [vmem:[#allocation2 + $0x4e0] sm:$0xff]  ;;  %v1752_v50 = vld [vmem:[#allocation2 + $0x4f0] sm:$0xff] }
 0x3fa   : > { %2021 = vmatpush1.msra.mxu1 %v1606_v51  ;;  %2092 = vmatpush1.msra.mxu0 %v1608_v52  ;;  %v1743_v51 = vld [vmem:[#allocation2 + $0x4a8] sm:$0xff]  ;;  %v1745_v52 = vld [vmem:[#allocation2 + $0x4b8] sm:$0xff] }
 0x3fb   : > { %2022 = vmatprep.subr.mxu1 %v1599_v54  ;;  %2093 = vmatprep.subr.mxu0 %v1601_v55  ;;  %v1742_v54 = vld [vmem:[#allocation2 + $0x4a0] sm:$0xff]  ;;  %v1744_v55 = vld [vmem:[#allocation2 + $0x4b0] sm:$0xff] }
 0x3fc   : > { %2023 = vmatpush1.msra.mxu1 %v1598_v56  ;;  %2094 = vmatpush1.msra.mxu0 %v1600_v57  ;;  %v1735_v56 = vld [vmem:[#allocation2 + $0x468] sm:$0xff]  ;;  %v1737_v57 = vld [vmem:[#allocation2 + $0x478] sm:$0xff] }
 0x3fd   : > { %2024 = vmatprep.subr.mxu1 %v1847_v58  ;;  %2095 = vmatprep.subr.mxu0 %v1849_v59  ;;  %v1734_v58 = vld [vmem:[#allocation2 + $0x460] sm:$0xff]  ;;  %v1736_v59 = vld [vmem:[#allocation2 + $0x470] sm:$0xff] }
 0x3fe   : > { %2025 = vmatpush2.msra.mxu1 %v1846_v60  ;;  %2096 = vmatpush2.msra.mxu0 %v1848_v61  ;;  %v1727_v60 = vld [vmem:[#allocation2 + $0x428] sm:$0xff]  ;;  %v1729_v61 = vld [vmem:[#allocation2 + $0x438] sm:$0xff] }
 0x3ff   : > { %2026 = vmatprep.subr.mxu1 %v1839_v62  ;;  %2097 = vmatprep.subr.mxu0 %v1841_v63  ;;  %v1726_v62 = vld [vmem:[#allocation2 + $0x420] sm:$0xff]  ;;  %v1728_v63 = vld [vmem:[#allocation2 + $0x430] sm:$0xff] }
 0x400   : > { %2027 = vmatpush2.msra.mxu1 %v1838_v1  ;;  %2098 = vmatpush2.msra.mxu0 %v1840_v2 }
 0x401   : > { %2028 = vmatprep.subr.mxu1 %v1831_v3  ;;  %2099 = vmatprep.subr.mxu0 %v1833_v4 }
 0x402   : > { %2029 = vmatpush2.msra.mxu1 %v1830_v5  ;;  %2100 = vmatpush2.msra.mxu0 %v1832_v6 }
 0x403   : > { %2030 = vmatprep.subr.mxu1 %v1823_v7  ;;  %2101 = vmatprep.subr.mxu0 %v1825_v8 }
 0x404   : > { %2031 = vmatpush2.msra.mxu1 %v1822_v9  ;;  %2102 = vmatpush2.msra.mxu0 %v1824_v10  ;;  %v6244_v10 = vld [vmem:[%s6930_s12 + $0x8] sm:$0xff] }
 0x405   : > { %2032 = vmatprep.subr.mxu1 %v1815_v11  ;;  %2103 = vmatprep.subr.mxu0 %v1817_v12 }
 0x406   : > { %2033 = vmatpush2.msra.mxu1 %v1814_v13  ;;  %2104 = vmatpush2.msra.mxu0 %v1816_v14  ;;  %v2245_v13 = vrot.slane %v6244_v10, %v6010_v34  ;;  %v6250_v14 = vsub.s32 3, %v6002_v31 }
 0x407   : > { %2034 = vmatprep.subr.mxu1 %v1807_v15  ;;  %2105 = vmatprep.subr.mxu0 %v1809_v16  ;;  %v6257_v15 = vsub.s32 2, %v6002_v31 }
 0x408   : > { %2035 = vmatpush2.msra.mxu1 %v1806_v17  ;;  %2106 = vmatpush2.msra.mxu0 %v1808_v18 }
 0x409   : > { %2036 = vmatprep.subr.mxu1 %v1799_v19  ;;  %2107 = vmatprep.subr.mxu0 %v1801_v20  ;;  %v2253_v20 = vrot.slane %v6244_v10, %v6250_v14 }
 0x40a   : > { %2037 = vmatpush2.msra.mxu1 %v1798_v21  ;;  %2108 = vmatpush2.msra.mxu0 %v1800_v22  ;;  %v2249_v21 = vrot.slane %v6244_v10, %v6257_v15 }
 0x40b   : > { %2038 = vmatprep.subr.mxu1 %v1791_v23  ;;  %2109 = vmatprep.subr.mxu0 %v1793_v24 }
 0x40c   : > { %2039 = vmatpush2.msra.mxu1 %v1790_v25  ;;  %2110 = vmatpush2.msra.mxu0 %v1792_v26 }
 0x40d   : > { %2040 = vmatprep.subr.mxu1 %v1783_v27  ;;  %2111 = vmatprep.subr.mxu0 %v1785_v28  ;;  %v6285_v28 = vld [vmem:[%s6928_s10 + $0x8] sm:$0xff] }
 0x40e   : > { %2041 = vmatpush2.msra.mxu1 %v1782_v29  ;;  %2112 = vmatpush2.msra.mxu0 %v1784_v30 }
 0x40f   : > { %2042 = vmatprep.subr.mxu1 %v1775_v35  ;;  %2113 = vmatprep.subr.mxu0 %v1777_v36  ;;  %v5395_v36 = vld [vmem:[%s6929_s11] sm:$0xff] }
 0x410   : > { %2043 = vmatpush2.msra.mxu1 %v1774_v37  ;;  %2114 = vmatpush2.msra.mxu0 %v1776_v38 }
 0x411   : > { %2044 = vmatprep.subr.mxu1 %v1767_v39  ;;  %2115 = vmatprep.subr.mxu0 %v1769_v40 }
 0x412   : > { %2045 = vmatpush2.msra.mxu1 %v1766_v41  ;;  %2116 = vmatpush2.msra.mxu0 %v1768_v42 }
 0x413   : > { %2046 = vmatprep.subr.mxu1 %v1759_v43  ;;  %2117 = vmatprep.subr.mxu0 %v1761_v44 }
 0x414   : > { %2047 = vmatpush2.msra.mxu1 %v1758_v45  ;;  %2118 = vmatpush2.msra.mxu0 %v1760_v46 }
 0x415   : > { %2048 = vmatprep.subr.mxu1 %v1751_v47  ;;  %2119 = vmatprep.subr.mxu0 %v1753_v48 }
 0x416   : > { %2049 = vmatpush2.msra.mxu1 %v1750_v49  ;;  %2120 = vmatpush2.msra.mxu0 %v1752_v50 }
 0x417   : > { %2050 = vmatprep.subr.mxu1 %v1743_v51  ;;  %2121 = vmatprep.subr.mxu0 %v1745_v52  ;;  %v6347_v51 = vsub.s32 7, %v6002_v31 }
 0x418   : > { %2051 = vmatpush2.msra.mxu1 %v1742_v54  ;;  %2122 = vmatpush2.msra.mxu0 %v1744_v55  ;;  %v2241_v55 = vrot.slane %v6244_v10, %v6007_v33 }
 0x419   : > { %2052 = vmatprep.subr.mxu1 %v1735_v56  ;;  %2123 = vmatprep.subr.mxu0 %v1737_v57  ;;  %v2269_v56 = vrot.slane %v6244_v10, %v6347_v51  ;;  %v6356_v57 = vsub.s32 5, %v6002_v31 }
 0x41a   : > { %2053 = vmatpush2.msra.mxu1 %v1734_v58  ;;  %2124 = vmatpush2.msra.mxu0 %v1736_v59  ;;  %v6359_v58 = vsub.s32 6, %v6002_v31  ;;  %v6362_v59 = vsub.s32 4, %v6002_v31 }
 0x41b   : > { %2054 = vmatprep.subr.mxu1 %v1727_v60  ;;  %2125 = vmatprep.subr.mxu0 %v1729_v61  ;;  %v6367_v60 = vld [vmem:[%s6930_s12] sm:$0xff]  ;;  %v2261_v31 = vrot.slane %v6244_v10, %v6356_v57 }
 0x41c   : > { %2055 = vmatpush2.msra.mxu1 %v1726_v62  ;;  %2126 = vmatpush2.msra.mxu0 %v1728_v63 }
 0x41d   : > { %2057 = vmatmul.mubr.f32.vlgmr.msra.gmra.mxu1 %v6111_v53  ;;  %2128 = vmatmul.mubr.f32.vlgmr.msra.gmra.mxu0 %v6111_v53 }
 0x41e   : > { %2426 = vmatprep.mubr.f32.mxu0 %v5769_v0  ;;  %2355 = vmatprep.mubr.f32.mxu1 %v5769_v0 }
 0x49c   : > { %v6119_v1 = vpop.f32.mrf.mxu1  ;;  %v6121_v2 = vpop.f32.mrf.mxu0 }
 0x49d   : > { %3908 = vrot.lane.b32.xlu0 %v6121_v2, %s5776_s23  ;;  %2210 = vrot.lane.b32.xlu1 %v6119_v1, %s5780_s17 }
 0x49e   : > { %v6131_v53 = vpop.f32.mrf.mxu1  ;;  %v6137_v3 = vpop.f32.mrf.mxu0 }
 0x4a1   : > { %4280 = vrot.lane.b32.xlu0 %v6121_v2, %s5781_s16  ;;  %2214 = vrot.lane.b32.xlu1 %v6121_v2, %s5780_s17 }
 0x4a5   : > { %2134 = vrot.lane.b32.xlu1 %v6119_v1, %s5782_s21  ;;  %2212 = vrot.lane.b32.xlu0 %v6131_v53, %s5780_s17 }
 0x4a9   : > { %2138 = vrot.lane.b32.xlu1 %v6121_v2, %s5782_s21  ;;  %2216 = vrot.lane.b32.xlu0 %v6137_v3, %s5780_s17 }
 0x4ad   : > { %2862 = vrot.lane.b32.xlu1 %v6119_v1, %s5783_s22  ;;  %2136 = vrot.lane.b32.xlu0 %v6131_v53, %s5782_s21 }
 0x4b1   : > { %2866 = vrot.lane.b32.xlu1 %v6121_v2, %s5783_s22  ;;  %2140 = vrot.lane.b32.xlu0 %v6137_v3, %s5782_s21 }
 0x4b5   : > { %3235 = vrot.lane.b32.xlu1 %v6119_v1, %s5775_s20  ;;  %2864 = vrot.lane.b32.xlu0 %v6131_v53, %s5783_s22 }
 0x4b9   : > { %3239 = vrot.lane.b32.xlu1 %v6121_v2, %s5775_s20  ;;  %2868 = vrot.lane.b32.xlu0 %v6137_v3, %s5783_s22 }
 0x4bd   : > { %3904 = vrot.lane.b32.xlu1 %v6119_v1, %s5776_s23  ;;  %3237 = vrot.lane.b32.xlu0 %v6131_v53, %s5775_s20 }
 0x4c1   : > { %3906 = vrot.lane.b32.xlu1 %v6131_v53, %s5776_s23  ;;  %3241 = vrot.lane.b32.xlu0 %v6137_v3, %s5775_s20 }
 0x4c5   : > { %3910 = vrot.lane.b32.xlu1 %v6137_v3, %s5776_s23 }
 0x4c9   : > { %4278 = vrot.lane.b32.xlu1 %v6131_v53, %s5781_s16 }
 0x4cd   : > { %4282 = vrot.lane.b32.xlu1 %v6137_v3, %s5781_s16 }
 0x4dd   : > { %v6173_v4 = vpop.f32.mrf.mxu1  ;;  %v6175_v5 = vpop.f32.mrf.mxu0 }
 0x4de   : > { %3916 = vrot.lane.b32.xlu1 %v6175_v5, %s5776_s23  ;;  %2218 = vrot.lane.b32.xlu0 %v6173_v4, %s5780_s17 }
 0x4df   : > { %v6181_v6 = vpop.f32.mrf.mxu0  ;;  %v6187_v7 = vpop.f32.mrf.mxu1 }
 0x4e2   : > { %2224 = vrot.lane.b32.xlu1 %v6181_v6, %s5780_s17  ;;  %2222 = vrot.lane.b32.xlu0 %v6175_v5, %s5780_s17 }
 0x4e6   : > { %2142 = vrot.lane.b32.xlu0 %v6173_v4, %s5782_s21  ;;  %2220 = vrot.lane.b32.xlu1 %v6187_v7, %s5780_s17  ;;  %s6871_s17 = scalar_lea.vmem [#allocation5], %s5509_s27 }
 0x4ea   : > { %2146 = vrot.lane.b32.xlu0 %v6175_v5, %s5782_s21  ;;  %2148 = vrot.lane.b32.xlu1 %v6181_v6, %s5782_s21 }
 0x4ee   : > { %2870 = vrot.lane.b32.xlu0 %v6173_v4, %s5783_s22  ;;  %2144 = vrot.lane.b32.xlu1 %v6187_v7, %s5782_s21  ;;  %s5432_s21 = sshll.u32 %s6871_s17, 4  ;;  %s5433_s21 = int_to_ptr.vmem [resolvable:$true] %s5432_s21 }
 0x4ef   : > { %s5700_s9 = scalar_lea.vmem %s5433_s21, 1024 }
 0x4f0   : > { %p5701_p6 = scmp.ne.s32.totalorder %s5433_s21, %s5700_s9 }
 0x4f2   : > { %2874 = vrot.lane.b32.xlu0 %v6175_v5, %s5783_s22  ;;  %2876 = vrot.lane.b32.xlu1 %v6181_v6, %s5783_s22  ;;  %p5702_p9 = pnand %p5701_p6, %p5895_p5 }
 0x4f4   : > { %p5703_p10 = pneg %p5702_p9 }
 0x4f6   : > { %3243 = vrot.lane.b32.xlu0 %v6173_v4, %s5775_s20  ;;  %2872 = vrot.lane.b32.xlu1 %v6187_v7, %s5783_s22 }
 0x4fa   : > { %3247 = vrot.lane.b32.xlu0 %v6175_v5, %s5775_s20  ;;  %3249 = vrot.lane.b32.xlu1 %v6181_v6, %s5775_s20 }
 0x4fe   : > { %3912 = vrot.lane.b32.xlu0 %v6173_v4, %s5776_s23  ;;  %3245 = vrot.lane.b32.xlu1 %v6187_v7, %s5775_s20  ;;  %s5785_s20 = smov 95  }
 0x502   : > { %4284 = vrot.lane.b32.xlu0 %v6173_v4, %s5781_s16  ;;  %4276 = vrot.lane.b32.xlu1 %v6119_v1, %s5781_s16 }
 0x506   : > { %4653 = vrot.lane.b32.xlu0 %v6121_v2, %s5784_s24  ;;  %4288 = vrot.lane.b32.xlu1 %v6175_v5, %s5781_s16 }
 0x50a   : > { %4657 = vrot.lane.b32.xlu0 %v6173_v4, %s5784_s24  ;;  %4651 = vrot.lane.b32.xlu1 %v6131_v53, %s5784_s24 }
 0x50e   : > { %5026 = vrot.lane.b32.xlu0 %v6121_v2, %s5785_s20  ;;  %4655 = vrot.lane.b32.xlu1 %v6137_v3, %s5784_s24 }
 0x50f   : > { %v6233_v8 = vpop.permute.xlu0 %3908  ;;  %v6235_v9 = vpop.permute.xlu1 %2210 }
 0x512   : > { %5030 = vrot.lane.b32.xlu0 %v6173_v4, %s5785_s20  ;;  %4649 = vrot.lane.b32.xlu1 %v6119_v1, %s5784_s24 }
 0x513   : > { %v4281_v11 = vpop.permute.xlu0 %4280  ;;  %v2215_v12 = vpop.permute.xlu1 %2214 }
 0x516   : > { %3914 = vrot.lane.b32.xlu0 %v6187_v7, %s5776_s23  ;;  %4661 = vrot.lane.b32.xlu1 %v6175_v5, %s5784_s24 }
 0x517   : > { %v6259_v16 = vpop.permute.xlu1 %2134  ;;  %v2213_v17 = vpop.permute.xlu0 %2212 }
 0x518   : > { %v2233_v18 = vsel %vm2226_vm13, %v6235_v9, %v2213_v17  ;;  %v2232_v22 = vsel %vm2226_vm13, %v2213_v17, %v2215_v12  ;;  %v2265_v17 = vrot.slane %v6244_v10, %v6359_v58 }
 0x519   : > { %v2279_v19 = vmul.f32 %v2245_v13, %v2233_v18  ;;  %v2280_v27 = vmul.f32 %v2249_v21, %v2232_v22  ;;  %v2168_v18 = vrot.slane %v6367_v60, %v6010_v34  ;;  %v6390_v21 = vld [vmem:[%s6930_s12 + $0x10] sm:$0xff] }
 0x51a   : > { %3918 = vrot.lane.b32.xlu0 %v6181_v6, %s5776_s23  ;;  %5024 = vrot.lane.b32.xlu1 %v6131_v53, %s5785_s20 }
 0x51b   : > { %v6274_v23 = vpop.permute.xlu1 %2138  ;;  %2321 = vmatprep.subr.mxu1 %v2279_v19  ;;  %v2217_v24 = vpop.permute.xlu0 %2216  ;;  %v2172_v19 = vrot.slane %v6367_v60, %v6257_v15 }
 0x51c   : > { %v2231_v25 = vsel %vm2226_vm13, %v2215_v12, %v2217_v24 }
 0x51d   : > { %v2281_v26 = vmul.f32 %v2253_v20, %v2231_v25  ;;  %v2176_v20 = vrot.slane %v6367_v60, %v6250_v14 }
 0x51e   : > { %4286 = vrot.lane.b32.xlu0 %v6187_v7, %s5781_s16  ;;  %5028 = vrot.lane.b32.xlu1 %v6137_v3, %s5785_s20 }
 0x51f   : > { %v6287_v29 = vpop.permute.xlu1 %2862  ;;  %2392 = vmatprep.subr.mxu0 %v2281_v26  ;;  %v2137_v38 = vpop.permute.xlu0 %2136 }
 0x520   : > { %2393 = vmatpush1.msra.mxu0 %v2280_v27  ;;  %v2164_v27 = vrot.slane %v6367_v60, %v6007_v33 }
 0x521   : > { %5542 = vmatmul.mubr.msk.f32.vlgmr.msra.gmra.mxu0 %vm676_vm4, %v6285_v28 }
 0x522   : > { %4290 = vrot.lane.b32.xlu0 %v6181_v6, %s5781_s16  ;;  %5022 = vrot.lane.b32.xlu1 %v6119_v1, %s5785_s20  ;;  %s5595_s16 = sshll.u32 %s5878_s29, 10  ;;  %s5786_s29 = smov [#allocation5]  }
 0x523   : > { %v6295_v30 = vpop.permute.xlu1 %2866  ;;  %2568 = vmatprep.mubr.f32.mxu0 %v5769_v0  ;;  %v6319_v41 = vpop.permute.xlu0 %2140  ;;  %s5704_s23 = sshll.u32 %s5786_s29, 4  ;;  %s5705_s23 = int_to_ptr.vmem [resolvable:$false] %s5704_s23 }
 0x524   : > { %s5706_s27 = scalar_lea.vmem %s5705_s23, 2048  ;;  %p5707_p11 = scmp.lt.s32.totalorder %s5433_s21, %s5705_s23 }
 0x525   : > { %p5708_p12 = scmp.lt.s32.totalorder %s5706_s27, %s5700_s9 }
 0x526   : > { %4659 = vrot.lane.b32.xlu0 %v6187_v7, %s5784_s24  ;;  %5034 = vrot.lane.b32.xlu1 %v6175_v5, %s5785_s20 }
 0x527   : > { %v6302_v35 = vpop.permute.xlu1 %3235  ;;  %v6324_v43 = vpop.permute.xlu0 %2864  ;;  %p5709_p13 = por %p5708_p12, %p5707_p11 }
 0x529   : > { %p5710_p0 = pnand %p5709_p13, %p5703_p10 }
 0x52a   : > { %4663 = vrot.lane.b32.xlu0 %v6181_v6, %s5784_s24  ;;  %5398 = vperm.xlu1 %5673, %v5395_v36   ;;  %v2155_v36 = vsel %vm2150_vm15, %v6274_v23, %v6319_v41 }
 0x52b   : > { %v6309_v37 = vpop.permute.xlu1 %3239  ;;  %v6335_v47 = vpop.permute.xlu0 %2868 }
 0x52e   : > { %5032 = vrot.lane.b32.xlu0 %v6187_v7, %s5785_s20 }
 0x52f   : > { %v6313_v39 = vpop.permute.xlu1 %3904  ;;  %v6342_v49 = vpop.permute.xlu0 %3237 }
 0x532   : > { %5036 = vrot.lane.b32.xlu0 %v6181_v6, %s5785_s20  ;;  %s5430_s20 = scalar_lea.hbm %s6931_s13, %s5595_s16 }
 0x533   : > { %v6317_v40 = vpop.permute.xlu1 %3906  ;;  %v6344_v50 = vpop.permute.xlu0 %3241 }
 0x537   : > { %v6321_v42 = vpop.permute.xlu1 %3910 }
 0x53b   : > { %v6326_v44 = vpop.permute.xlu1 %4278 }
 0x53c   : > { %v6331_v45 = vsel %vm4292_vm14, %v6326_v44, %v4281_v11 }
 0x53f   : > { %v6333_v46 = vpop.permute.xlu1 %4282 }
 0x540   : > { %v6340_v48 = vsel %vm4292_vm14, %v4281_v11, %v6333_v46 }
 0x541   : > { %6942 = vst [vmem:[#allocation10_spill] sm:$0xff] %v6340_v48 }
 0x550   : > { %v6349_v52 = vpop.permute.xlu1 %3916  ;;  %v2219_v54 = vpop.permute.xlu0 %2218 }
 0x551   : > { %v2230_v22 = vsel %vm2226_vm13, %v2217_v24, %v2219_v54 }
 0x554   : > { %v2225_v61 = vpop.permute.xlu1 %2224  ;;  %v2223_v62 = vpop.permute.xlu0 %2222 }
 0x555   : > { %v2234_v63 = vsel %vm2226_vm13, %v2225_v61, %v6235_v9  ;;  %v2227_v11 = vsel %vm2226_vm13, %v2223_v62, %v2225_v61  ;;  %v2257_v9 = vrot.slane %v6244_v10, %v6362_v59  ;;  %v2157_v10 = vsel %vm2150_vm15, %v6259_v16, %v2137_v38 }
 0x556   : > { %v2278_v12 = vmul.f32 %v2241_v55, %v2234_v63  ;;  %v2285_v13 = vmul.f32 %v2269_v56, %v2227_v11  ;;  %v2156_v56 = vsel %vm2150_vm15, %v2137_v38, %v6274_v23  ;;  %v2192_v11 = vrot.slane %v6367_v60, %v6347_v51 }
 0x557   : > { %v2184_v38 = vrot.slane %v6367_v60, %v6356_v57 }
 0x558   : > { %2322 = vmatpush1.msra.mxu1 %v2278_v12  ;;  %2534 = vmatprep.subr.mxu0 %v2285_v13  ;;  %v2143_v25 = vpop.permute.xlu0 %2142  ;;  %v2221_v26 = vpop.permute.xlu1 %2220  ;;  %v2282_v12 = vmul.f32 %v2257_v9, %v2230_v22  ;;  %v2202_v13 = vmul.f32 %v2168_v18, %v2157_v10  ;;  %v2209_v22 = vld [vmem:[%s6928_s10] sm:$0xff]  ;;  %v6449_v10 = vld [vmem:[%s6930_s12 + $0x18] sm:$0xff] }
 0x559   : > { %v2228_v55 = vsel %vm2226_vm13, %v2221_v26, %v2223_v62  ;;  %v2229_v24 = vsel %vm2226_vm13, %v2219_v54, %v2221_v26  ;;  %5541 = vmatmul.mubr.msk.f32.vlgmr.msra.gmra.mxu1 %vm676_vm4, %v6285_v28  ;;  %v2897_v62 = vrot.slane %v6390_v21, %v6010_v34  ;;  %v2901_v54 = vrot.slane %v6390_v21, %v6257_v15 }
 0x55a   : > { %v2283_v61 = vmul.f32 %v2261_v31, %v2229_v24  ;;  %v2284_v63 = vmul.f32 %v2265_v17, %v2228_v55  ;;  %2497 = vmatprep.mubr.f32.mxu1 %v5769_v0  ;;  %v2204_v26 = vmul.f32 %v2176_v20, %v2155_v36  ;;  %v2203_v31 = vmul.f32 %v2172_v19, %v2156_v56 }
 0x55b   : > { %v2188_v19 = vrot.slane %v6367_v60, %v6359_v58  ;;  %v2905_v20 = vrot.slane %v6390_v21, %v6250_v14  ;;  %v2921_v56 = vrot.slane %v6390_v21, %v6347_v51 }
 0x55c   : > { %v2147_v48 = vpop.permute.xlu0 %2146  ;;  %2463 = vmatprep.subr.mxu1 %v2283_v61  ;;  %2535 = vmatpush1.msra.mxu0 %v2284_v63  ;;  %v2149_v23 = vpop.permute.xlu1 %2148  ;;  %v2885_v61 = vsel %vm2878_vm0, %v6287_v29, %v6324_v43 }
 0x55d   : > { %v2151_v17 = vsel %vm2150_vm15, %v2147_v48, %v2149_v23  ;;  %v2158_v55 = vsel %vm2150_vm15, %v2149_v23, %v6259_v16  ;;  %2464 = vmatpush1.msra.mxu1 %v2282_v12  ;;  %5544 = vmatmul.mubr.msk.f32.vlgmr.msra.gmra.mxu0 %vm676_vm4, %v6285_v28  ;;  %v2180_v16 = vrot.slane %v6367_v60, %v6362_v59 }
 0x55e   : > { %v2201_v18 = vmul.f32 %v2164_v27, %v2158_v55  ;;  %v2208_v9 = vmul.f32 %v2192_v11, %v2151_v17  ;;  %2679 = vmatprep.subr.mxu0 %v2204_v26  ;;  %5543 = vmatmul.mubr.msk.f32.vlgmr.msra.gmra.mxu1 %vm676_vm4, %v6285_v28  ;;  %v2893_v27 = vrot.slane %v6390_v21, %v6007_v33 }
 0x55f   : > { %2608 = vmatprep.subr.mxu1 %v2202_v13  ;;  %2680 = vmatpush1.msra.mxu0 %v2203_v31  ;;  %v2883_v28 = vsel %vm2878_vm0, %v6295_v30, %v6335_v47  ;;  %v2154_v60 = vsel %vm2150_vm15, %v6319_v41, %v2143_v25  ;;  %v2884_v11 = vsel %vm2878_vm0, %v6324_v43, %v6295_v30 }
 0x560   : > { %v2871_v36 = vpop.permute.xlu0 %2870  ;;  %2609 = vmatpush1.msra.mxu1 %v2201_v18  ;;  %2713 = vmatprep.mubr.f32.mxu0 %v5769_v0  ;;  %v2145_v24 = vpop.permute.xlu1 %2144  ;;  %v2933_v26 = vmul.f32 %v2905_v20, %v2883_v28  ;;  %v2205_v23 = vmul.f32 %v2180_v16, %v2154_v60  ;;  %v3273_v31 = vrot.slane %v6449_v10, %v6257_v15 }
 0x561   : > { %2821 = vmatprep.subr.mxu0 %v2208_v9  ;;  %v2152_v63 = vsel %vm2150_vm15, %v2145_v24, %v2147_v48  ;;  %v2153_v41 = vsel %vm2150_vm15, %v2143_v25, %v2145_v24  ;;  %2642 = vmatprep.mubr.f32.mxu1 %v5769_v0  ;;  %v3269_v48 = vrot.slane %v6449_v10, %v6010_v34 }
 0x562   : > { %v2206_v12 = vmul.f32 %v2184_v38, %v2153_v41  ;;  %v2207_v13 = vmul.f32 %v2188_v19, %v2152_v63  ;;  %5546 = vmatmul.mubr.msk.f32.vlgmr.msra.gmra.mxu0 %vm676_vm4, %v2209_v22  ;;  %5545 = vmatmul.mubr.msk.f32.vlgmr.msra.gmra.mxu1 %vm676_vm4, %v2209_v22  ;;  %v2931_v25 = vmul.f32 %v2897_v62, %v2885_v61 }
 0x563   : > { %2855 = vmatprep.mubr.f32.mxu0 %v5769_v0  ;;  %2784 = vmatprep.mubr.f32.mxu1 %v5769_v0  ;;  %v2913_v38 = vrot.slane %v6390_v21, %v6356_v57  ;;  %v2932_v17 = vmul.f32 %v2901_v54, %v2884_v11  ;;  %v2917_v19 = vrot.slane %v6390_v21, %v6359_v58 }
 0x564   : > { %v2875_v30 = vpop.permute.xlu0 %2874  ;;  %2750 = vmatprep.subr.mxu1 %v2206_v12  ;;  %2822 = vmatpush1.msra.mxu0 %v2207_v13  ;;  %v2877_v43 = vpop.permute.xlu1 %2876  ;;  %v3277_v54 = vrot.slane %v6449_v10, %v6250_v14  ;;  %v2909_v20 = vrot.slane %v6390_v21, %v6362_v59  ;;  %v3265_v16 = vrot.slane %v6449_v10, %v6007_v33 }
 0x565   : > { %v2879_v55 = vsel %vm2878_vm0, %v2875_v30, %v2877_v43  ;;  %v2886_v18 = vsel %vm2878_vm0, %v2877_v43, %v6287_v29  ;;  %2751 = vmatpush1.msra.mxu1 %v2205_v23  ;;  %3044 = vmatprep.subr.mxu0 %v2933_v26  ;;  %v5550_v29 = vld [vmem:[%s6928_s10 + $0x10] sm:$0xff]  ;;  %v3293_v60 = vrot.slane %v6449_v10, %v6347_v51 }
 0x566   : > { %v2930_v62 = vmul.f32 %v2893_v27, %v2886_v18  ;;  %v2937_v9 = vmul.f32 %v2921_v56, %v2879_v55  ;;  %5548 = vmatmul.mubr.msk.f32.vlgmr.msra.gmra.mxu0 %vm676_vm4, %v2209_v22  ;;  %5547 = vmatmul.mubr.msk.f32.vlgmr.msra.gmra.mxu1 %vm676_vm4, %v2209_v22  ;;  %v3255_v22 = vsel %vm929_vm8, %v6309_v37, %v6344_v50 }
 0x567   : > { %2973 = vmatprep.subr.mxu1 %v2931_v25  ;;  %3045 = vmatpush1.msra.mxu0 %v2932_v17  ;;  %v2882_v27 = vsel %vm2878_vm0, %v6335_v47, %v2871_v36  ;;  %v3257_v24 = vsel %vm929_vm8, %v6302_v35, %v6342_v49  ;;  %v3256_v61 = vsel %vm929_vm8, %v6342_v49, %v6309_v37 }
 0x568   : > { %v3244_v28 = vpop.permute.xlu0 %3243  ;;  %2974 = vmatpush1.msra.mxu1 %v2930_v62  ;;  %3078 = vmatprep.mubr.f32.mxu0 %v5769_v0  ;;  %v2873_v21 = vpop.permute.xlu1 %2872  ;;  %v3305_v11 = vmul.f32 %v3277_v54, %v3255_v22  ;;  %v2934_v12 = vmul.f32 %v2909_v20, %v2882_v27  ;;  %v3285_v37 = vrot.slane %v6449_v10, %v6356_v57 }
 0x569   : > { %3186 = vmatprep.subr.mxu0 %v2937_v9  ;;  %v2880_v56 = vsel %vm2878_vm0, %v2873_v21, %v2875_v30  ;;  %v2881_v47 = vsel %vm2878_vm0, %v2871_v36, %v2873_v21  ;;  %3007 = vmatprep.mubr.f32.mxu1 %v5769_v0  ;;  %v3303_v36 = vmul.f32 %v3269_v48, %v3257_v24 }
 0x56a   : > { %v2935_v63 = vmul.f32 %v2913_v38, %v2881_v47  ;;  %v2936_v41 = vmul.f32 %v2917_v19, %v2880_v56  ;;  %5552 = vmatmul.mubr.msk.f32.vlgmr.msra.gmra.mxu0 %vm676_vm4, %v5550_v29  ;;  %5551 = vmatmul.mubr.msk.f32.vlgmr.msra.gmra.mxu1 %vm676_vm4, %v5550_v29  ;;  %v3304_v49 = vmul.f32 %v3273_v31, %v3256_v61  ;;  %v6559_v19 = vld [vmem:[%s6930_s12 + $0x28] sm:$0xff] }
 0x56b   : > { %3220 = vmatprep.mubr.f32.mxu0 %v5769_v0  ;;  %3149 = vmatprep.mubr.f32.mxu1 %v5769_v0  ;;  %v3289_v48 = vrot.slane %v6449_v10, %v6359_v58  ;;  %v3281_v31 = vrot.slane %v6449_v10, %v6362_v59  ;;  %v3254_v38 = vsel %vm929_vm8, %v6344_v50, %v3244_v28 }
 0x56c   : > { %v3248_v13 = vpop.permute.xlu0 %3247  ;;  %3115 = vmatprep.subr.mxu1 %v2935_v63  ;;  %3187 = vmatpush1.msra.mxu0 %v2936_v41  ;;  %v3250_v26 = vpop.permute.xlu1 %3249  ;;  %v3925_v27 = vsel %vm1107_vm9, %v6317_v40, %v6233_v8  ;;  %v6638_v63 = vld [vmem:[%s6930_s12 + $0x30] sm:$0xff]  ;;  %v3950_v41 = vrot.slane %v6559_v19, %v6362_v59 }
 0x56d   : > { %v3251_v23 = vsel %vm929_vm8, %v3248_v13, %v3250_v26  ;;  %v3258_v25 = vsel %vm929_vm8, %v3250_v26, %v6302_v35  ;;  %3116 = vmatpush1.msra.mxu1 %v2934_v12  ;;  %3416 = vmatprep.subr.mxu0 %v3305_v11  ;;  %v5556_v35 = vld [vmem:[%s6928_s10 + $0x18] sm:$0xff]  ;;  %v3306_v50 = vmul.f32 %v3281_v31, %v3254_v38 }
 0x56e   : > { %v3302_v30 = vmul.f32 %v3265_v16, %v3258_v25  ;;  %v3309_v43 = vmul.f32 %v3293_v60, %v3251_v23  ;;  %5554 = vmatmul.mubr.msk.f32.vlgmr.msra.gmra.mxu0 %vm676_vm4, %v5550_v29  ;;  %5553 = vmatmul.mubr.msk.f32.vlgmr.msra.gmra.mxu1 %vm676_vm4, %v5550_v29  ;;  %v3946_v29 = vrot.slane %v6559_v19, %v6250_v14 }
 0x56f   : > { %3345 = vmatprep.subr.mxu1 %v3303_v36  ;;  %3417 = vmatpush1.msra.mxu0 %v3304_v49  ;;  %v3938_v16 = vrot.slane %v6559_v19, %v6010_v34  ;;  %v3926_v60 = vsel %vm1107_vm9, %v6313_v39, %v6317_v40  ;;  %v3954_v11 = vrot.slane %v6559_v19, %v6356_v57 }
 0x570   : > { %v6544_v17 = vpop.permute.xlu0 %3912  ;;  %3346 = vmatpush1.msra.mxu1 %v3302_v30  ;;  %3450 = vmatprep.mubr.f32.mxu0 %v5769_v0  ;;  %v3246_v55 = vpop.permute.xlu1 %3245  ;;  %v4311_v12 = vrot.slane %v6638_v63, %v6010_v34  ;;  %v4307_v26 = vrot.slane %v6638_v63, %v6007_v33  ;;  %v3958_v23 = vrot.slane %v6559_v19, %v6359_v58 }
 0x571   : > { %3558 = vmatprep.subr.mxu0 %v3309_v43  ;;  %v3252_v10 = vsel %vm929_vm8, %v3246_v55, %v3248_v13  ;;  %v3253_v18 = vsel %vm929_vm8, %v3244_v28, %v3246_v55  ;;  %3379 = vmatprep.mubr.f32.mxu1 %v5769_v0  ;;  %v3923_v22 = vsel %vm1107_vm9, %v6321_v42, %v6544_v17 }
 0x572   : > { %v3307_v62 = vmul.f32 %v3285_v37, %v3253_v18  ;;  %v3308_v9 = vmul.f32 %v3289_v48, %v3252_v10  ;;  %5558 = vmatmul.mubr.msk.f32.vlgmr.msra.gmra.mxu0 %vm676_vm4, %v5556_v35  ;;  %5557 = vmatmul.mubr.msk.f32.vlgmr.msra.gmra.mxu1 %vm676_vm4, %v5556_v35  ;;  %v3972_v24 = vmul.f32 %v3938_v16, %v3925_v27  ;;  %v6676_v18 = vld [vmem:[%s6930_s12 + $0x38] sm:$0xff] }
 0x573   : > { %3592 = vmatprep.mubr.f32.mxu0 %v5769_v0  ;;  %3521 = vmatprep.mubr.f32.mxu1 %v5769_v0  ;;  %v3962_v48 = vrot.slane %v6559_v19, %v6347_v51  ;;  %v4345_v31 = vmul.f32 %v4311_v12, %v6331_v45  ;;  %v4319_v38 = vrot.slane %v6638_v63, %v6250_v14 }
 0x574   : > { %v6561_v54 = vpop.permute.xlu0 %4284  ;;  %3487 = vmatprep.subr.mxu1 %v3307_v62  ;;  %3559 = vmatpush1.msra.mxu0 %v3308_v9  ;;  %v6563_v20 = vpop.permute.xlu1 %4276  ;;  %v4327_v9 = vrot.slane %v6638_v63, %v6356_v57 }
 0x575   : > { %3488 = vmatpush1.msra.mxu1 %v3306_v50  ;;  %3713 = vmatprep.subr.mxu0 %v6137_v3  ;;  %v5561_v3 = vld [vmem:[%s6928_s10 + $0x20] sm:$0xff]  ;;  %v4299_v25 = vsel %vm4292_vm14, %v6563_v20, %v6326_v44  ;;  %v4323_v44 = vrot.slane %v6638_v63, %v6362_v59  ;;  %v4296_v50 = vsel %vm4292_vm14, %v6333_v46, %v6561_v54  ;;  %v5573_v46 = vld [vmem:[%s6928_s10 + $0x30] sm:$0xff] }
 0x576   : > { %5560 = vmatmul.mubr.msk.f32.vlgmr.msra.gmra.mxu0 %vm676_vm4, %v5556_v35  ;;  %5559 = vmatmul.mubr.msk.f32.vlgmr.msra.gmra.mxu1 %vm676_vm4, %v5556_v35  ;;  %v4315_v35 = vrot.slane %v6638_v63, %v6257_v15  ;;  %v4344_v10 = vmul.f32 %v4307_v26, %v4299_v25  ;;  %v4700_v26 = vrot.slane %v6676_v18, %v6356_v57 }
 0x577   : > { %3642 = vmatprep.subr.mxu1 %v6131_v53  ;;  %3714 = vmatpush1.msra.mxu0 %v6121_v2  ;;  %v3942_v2 = vrot.slane %v6559_v19, %v6257_v15  ;;  %v3934_v53 = vrot.slane %v6559_v19, %v6007_v33 }
 0x578   : > { %3643 = vmatpush1.msra.mxu1 %v6119_v1  ;;  %3855 = vmatprep.subr.mxu0 %v6181_v6  ;;  %v6587_v28 = vpop.permute.xlu0 %4653  ;;  %v6589_v21 = vpop.permute.xlu1 %4288  ;;  %v3924_v1 = vsel %vm1107_vm9, %v6233_v8, %v6321_v42  ;;  %v3974_v6 = vmul.f32 %v3946_v29, %v3923_v22  ;;  %v4331_v22 = vrot.slane %v6638_v63, %v6359_v58 }
 0x579   : > { %3747 = vmatprep.mubr.f32.mxu0 %v5769_v0  ;;  %3784 = vmatprep.subr.mxu1 %v6187_v7  ;;  %v3973_v42 = vmul.f32 %v3942_v2, %v3924_v1  ;;  %v3971_v56 = vmul.f32 %v3934_v53, %v3926_v60  ;;  %v6943_v1 = vld [vmem:[#allocation10_spill] sm:$0xff] }
 0x57a   : > { %3676 = vmatprep.mubr.f32.mxu1 %v5769_v0  ;;  %5563 = vmatmul.mubr.msk.f32.vlgmr.msra.gmra.mxu0 %vm676_vm4, %v5561_v3 }
 0x57b   : > { %3856 = vmatpush1.msra.mxu0 %v6175_v5  ;;  %5562 = vmatmul.mubr.msk.f32.vlgmr.msra.gmra.mxu1 %vm676_vm4, %v5561_v3 }
 0x57c   : > { %3785 = vmatpush1.msra.mxu1 %v6173_v4  ;;  %4085 = vmatprep.subr.mxu0 %v3974_v6  ;;  %v6610_v7 = vpop.permute.xlu0 %4657  ;;  %v6612_v8 = vpop.permute.xlu1 %4651  ;;  %v5567_v4 = vld [vmem:[%s6928_s10 + $0x28] sm:$0xff]  ;;  %v4346_v6 = vmul.f32 %v4315_v35, %v6943_v1 }
 0x57d   : > { %4014 = vmatprep.subr.mxu1 %v3972_v24  ;;  %3889 = vmatprep.mubr.f32.mxu0 %v5769_v0  ;;  %v4671_v27 = vsel %vm4665_vm1, %v6612_v8, %v6587_v28 }
 0x57e   : > { %3818 = vmatprep.mubr.f32.mxu1 %v5769_v0  ;;  %5565 = vmatmul.mubr.msk.f32.vlgmr.msra.gmra.mxu0 %vm676_vm4, %v5561_v3 }
 0x57f   : > { %4086 = vmatpush1.msra.mxu0 %v3973_v42  ;;  %5564 = vmatmul.mubr.msk.f32.vlgmr.msra.gmra.mxu1 %vm676_vm4, %v5561_v3  ;;  %v4347_v3 = vmul.f32 %v4319_v38, %v4296_v50  ;;  %v5579_v38 = vld [vmem:[%s6928_s10 + $0x38] sm:$0xff] }
 0x580   : > { %4015 = vmatpush1.msra.mxu1 %v3971_v56  ;;  %v6621_v5 = vpop.permute.xlu0 %5026  ;;  %4119 = vmatprep.mubr.f32.mxu0 %v5769_v0  ;;  %v6624_v40 = vpop.permute.xlu1 %4655  ;;  %v4335_v56 = vrot.slane %v6638_v63, %v6347_v51 }
 0x581   : > { %4048 = vmatprep.mubr.f32.mxu1 %v5769_v0 }
 0x582   : > { %5569 = vmatmul.mubr.msk.f32.vlgmr.msra.gmra.mxu0 %vm676_vm4, %v5567_v4 }
 0x583   : > { %5568 = vmatmul.mubr.msk.f32.vlgmr.msra.gmra.mxu1 %vm676_vm4, %v5567_v4  ;;  %4261 = vmatprep.mubr.f32.mxu0 %v5769_v0 }
 0x584   : > { %v6630_v47 = vpop.permute.xlu0 %5030  ;;  %v6632_v61 = vpop.permute.xlu1 %4649  ;;  %4190 = vmatprep.mubr.f32.mxu1 %v5769_v0 }
 0x588   : > { %v3915_v36 = vpop.permute.xlu0 %3914  ;;  %v6646_v13 = vpop.permute.xlu1 %4661 }
 0x589   : > { %v3921_v37 = vsel %vm1107_vm9, %v3915_v36, %v6349_v52  ;;  %v3922_v49 = vsel %vm1107_vm9, %v6544_v17, %v3915_v36  ;;  %v4696_v36 = vrot.slane %v6676_v18, %v6362_v59 }
 0x58a   : > { %v3975_v30 = vmul.f32 %v3950_v41, %v3922_v49  ;;  %v3976_v43 = vmul.f32 %v3954_v11, %v3921_v37  ;;  %v4688_v41 = vrot.slane %v6676_v18, %v6257_v15  ;;  %v4692_v11 = vrot.slane %v6676_v18, %v6250_v14 }
 0x58c   : > { %v3919_v17 = vpop.permute.xlu0 %3918  ;;  %4156 = vmatprep.subr.mxu1 %v3976_v43  ;;  %v6669_v55 = vpop.permute.xlu1 %5024 }
 0x58d   : > { %v3920_v45 = vsel %vm1107_vm9, %v6349_v52, %v3919_v17  ;;  %v3927_v62 = vsel %vm1107_vm9, %v3919_v17, %v6313_v39  ;;  %4157 = vmatpush1.msra.mxu1 %v3975_v30  ;;  %v4684_v39 = vrot.slane %v6676_v18, %v6010_v34  ;;  %v4680_v52 = vrot.slane %v6676_v18, %v6007_v33 }
 0x58e   : > { %v3977_v19 = vmul.f32 %v3958_v23, %v3920_v45  ;;  %v3978_v29 = vmul.f32 %v3962_v48, %v3927_v62  ;;  %5570 = vmatmul.mubr.msk.f32.vlgmr.msra.gmra.mxu1 %vm676_vm4, %v5567_v4  ;;  %4387 = vmatprep.subr.mxu1 %v4345_v31 }
 0x58f   : > { %4388 = vmatpush1.msra.mxu1 %v4344_v10  ;;  %4421 = vmatprep.mubr.f32.mxu1 %v5769_v0  ;;  %v4718_v12 = vmul.f32 %v4684_v39, %v4671_v27 }
 0x590   : > { %v4287_v16 = vpop.permute.xlu0 %4286  ;;  %4227 = vmatprep.subr.mxu0 %v3978_v29  ;;  %v6713_v42 = vpop.permute.xlu1 %5028 }
 0x591   : > { %v4294_v2 = vsel %vm4292_vm14, %v4287_v16, %v6589_v21  ;;  %v4295_v53 = vsel %vm4292_vm14, %v6561_v54, %v4287_v16  ;;  %4228 = vmatpush1.msra.mxu0 %v3977_v19  ;;  %v4672_v54 = vsel %vm4665_vm1, %v6632_v61, %v6612_v8  ;;  %v4669_v8 = vsel %vm4665_vm1, %v6624_v40, %v6610_v7  ;;  %v5585_v16 = vld [vmem:[%s6928_s10 + $0x40] sm:$0xff] }
 0x592   : > { %v4348_v60 = vmul.f32 %v4323_v44, %v4295_v53  ;;  %v4349_v24 = vmul.f32 %v4327_v9, %v4294_v2  ;;  %5571 = vmatmul.mubr.msk.f32.vlgmr.msra.gmra.mxu0 %vm676_vm4, %v5567_v4  ;;  %5574 = vmatmul.mubr.msk.f32.vlgmr.msra.gmra.mxu1 %vm676_vm4, %v5573_v46  ;;  %v6730_v4 = vld [vmem:[%s6930_s12 + $0x40] sm:$0xff]  ;;  %v4717_v23 = vmul.f32 %v4680_v52, %v4672_v54 }
 0x593   : > { %4458 = vmatprep.subr.mxu0 %v4347_v3  ;;  %4492 = vmatprep.mubr.f32.mxu0 %v5769_v0  ;;  %v5053_v43 = vrot.slane %v6730_v4, %v6007_v33  ;;  %v4720_v48 = vmul.f32 %v4692_v11, %v4669_v8  ;;  %v5044_v33 = vsel %vm5038_vm2, %v6669_v55, %v6621_v5 }
 0x594   : > { %4459 = vmatpush1.msra.mxu0 %v4346_v6  ;;  %v4291_v63 = vpop.permute.xlu0 %4290  ;;  %4529 = vmatprep.subr.mxu1 %v4349_v24  ;;  %v6759_v31 = vpop.permute.xlu1 %5022  ;;  %v5065_v62 = vrot.slane %v6730_v4, %v6250_v14  ;;  %v5069_v19 = vrot.slane %v6730_v4, %v6362_v59  ;;  %v5042_v14 = vsel %vm5038_vm2, %v6713_v42, %v6630_v47 }
 0x595   : > { %v4293_v37 = vsel %vm4292_vm14, %v6589_v21, %v4291_v63  ;;  %v4300_v49 = vsel %vm4292_vm14, %v4291_v63, %v6563_v20  ;;  %4530 = vmatpush1.msra.mxu1 %v4348_v60  ;;  %4563 = vmatprep.mubr.f32.mxu1 %v5769_v0  ;;  %v4670_v21 = vsel %vm4665_vm1, %v6587_v28, %v6624_v40 }
 0x596   : > { %v4350_v25 = vmul.f32 %v4331_v22, %v4293_v37  ;;  %v4351_v30 = vmul.f32 %v4335_v56, %v4300_v49  ;;  %5575 = vmatmul.mubr.msk.f32.vlgmr.msra.gmra.mxu0 %vm676_vm4, %v5573_v46  ;;  %v5057_v20 = vrot.slane %v6730_v4, %v6010_v34  ;;  %5576 = vmatmul.mubr.msk.f32.vlgmr.msra.gmra.mxu1 %vm676_vm4, %v5573_v46 }
 0x597   : > { %4760 = vmatprep.subr.mxu1 %v4718_v12  ;;  %v4704_v28 = vrot.slane %v6676_v18, %v6359_v58  ;;  %v4708_v34 = vrot.slane %v6676_v18, %v6347_v51  ;;  %4634 = vmatprep.mubr.f32.mxu0 %v5769_v0  ;;  %v4719_v44 = vmul.f32 %v4688_v41, %v4670_v21 }
 0x598   : > { %4761 = vmatpush1.msra.mxu1 %v4717_v23  ;;  %v4660_v35 = vpop.permute.xlu0 %4659  ;;  %4600 = vmatprep.subr.mxu0 %v4351_v30  ;;  %v5061_v18 = vrot.slane %v6730_v4, %v6257_v15  ;;  %v5091_v9 = vmul.f32 %v5057_v20, %v5044_v33  ;;  %v5073_v15 = vrot.slane %v6730_v4, %v6356_v57 }
 0x599   : > { %v4667_v40 = vsel %vm4665_vm1, %v4660_v35, %v6646_v13  ;;  %v4668_v17 = vsel %vm4665_vm1, %v6610_v7, %v4660_v35  ;;  %4601 = vmatpush1.msra.mxu0 %v4350_v25  ;;  %4794 = vmatprep.mubr.f32.mxu1 %v5769_v0  ;;  %v5045_v7 = vsel %vm5038_vm2, %v6759_v31, %v6669_v55 }
 0x59a   : > { %v4721_v10 = vmul.f32 %v4696_v36, %v4668_v17  ;;  %v4722_v45 = vmul.f32 %v4700_v26, %v4667_v40  ;;  %5577 = vmatmul.mubr.msk.f32.vlgmr.msra.gmra.mxu0 %vm676_vm4, %v5573_v46  ;;  %5580 = vmatmul.mubr.msk.f32.vlgmr.msra.gmra.mxu1 %vm676_vm4, %v5579_v38  ;;  %v5090_v59 = vmul.f32 %v5053_v43, %v5045_v7 }
 0x59b   : > { %4831 = vmatprep.subr.mxu0 %v4720_v48  ;;  %4865 = vmatprep.mubr.f32.mxu0 %v5769_v0  ;;  %v5043_v57 = vsel %vm5038_vm2, %v6621_v5, %v6713_v42  ;;  %v5077_v46 = vrot.slane %v6730_v4, %v6359_v58  ;;  %v5081_v22 = vrot.slane %v6730_v4, %v6347_v51 }
 0x59c   : > { %4832 = vmatpush1.msra.mxu0 %v4719_v44  ;;  %v4664_v50 = vpop.permute.xlu0 %4663  ;;  %4902 = vmatprep.subr.mxu1 %v4722_v45  ;;  %v5093_v3 = vmul.f32 %v5065_v62, %v5042_v14  ;;  %v5092_v2 = vmul.f32 %v5061_v18, %v5043_v57 }
 0x59d   : > { %v4666_v55 = vsel %vm4665_vm1, %v6646_v13, %v4664_v50  ;;  %v4673_v29 = vsel %vm4665_vm1, %v4664_v50, %v6632_v61  ;;  %4903 = vmatpush1.msra.mxu1 %v4721_v10  ;;  %4936 = vmatprep.mubr.f32.mxu1 %v5769_v0  ;;  %v5035_v13 = vpop.permute.xlu1 %5034 }
 0x59e   : > { %v4723_v39 = vmul.f32 %v4704_v28, %v4666_v55  ;;  %v4724_v52 = vmul.f32 %v4708_v34, %v4673_v29  ;;  %5581 = vmatmul.mubr.msk.f32.vlgmr.msra.gmra.mxu0 %vm676_vm4, %v5579_v38  ;;  %5582 = vmatmul.mubr.msk.f32.vlgmr.msra.gmra.mxu1 %vm676_vm4, %v5579_v38 }
 0x59f   : > { %5133 = vmatprep.subr.mxu1 %v5091_v9  ;;  %5007 = vmatprep.mubr.f32.mxu0 %v5769_v0 }
 0x5a0   : > { %5134 = vmatpush1.msra.mxu1 %v5090_v59  ;;  %v5033_v61 = vpop.permute.xlu0 %5032  ;;  %4973 = vmatprep.subr.mxu0 %v4724_v52 }
 0x5a1   : > { %v5040_v5 = vsel %vm5038_vm2, %v5033_v61, %v5035_v13  ;;  %v5041_v27 = vsel %vm5038_vm2, %v6630_v47, %v5033_v61  ;;  %4974 = vmatpush1.msra.mxu0 %v4723_v39  ;;  %5167 = vmatprep.mubr.f32.mxu1 %v5769_v0 }
 0x5a2   : > { %v5094_v53 = vmul.f32 %v5069_v19, %v5041_v27  ;;  %v5095_v1 = vmul.f32 %v5073_v15, %v5040_v5  ;;  %5583 = vmatmul.mubr.msk.f32.vlgmr.msra.gmra.mxu0 %vm676_vm4, %v5579_v38  ;;  %5586 = vmatmul.mubr.msk.f32.vlgmr.msra.gmra.mxu1 %vm676_vm4, %v5585_v16 }
 0x5a3   : > { %5204 = vmatprep.subr.mxu0 %v5093_v3  ;;  %5238 = vmatprep.mubr.f32.mxu0 %v5769_v0 }
 0x5a4   : > { %5205 = vmatpush1.msra.mxu0 %v5092_v2  ;;  %v5037_v51 = vpop.permute.xlu0 %5036  ;;  %5275 = vmatprep.subr.mxu1 %v5095_v1 }
 0x5a5   : > { %v5039_v58 = vsel %vm5038_vm2, %v5035_v13, %v5037_v51  ;;  %v5046_v47 = vsel %vm5038_vm2, %v5037_v51, %v6759_v31  ;;  %5276 = vmatpush1.msra.mxu1 %v5094_v53  ;;  %5309 = vmatprep.mubr.f32.mxu1 %v5769_v0 }
 0x5a6   : > { %v5096_v6 = vmul.f32 %v5077_v46, %v5039_v58  ;;  %v5097_v60 = vmul.f32 %v5081_v22, %v5046_v47  ;;  %5587 = vmatmul.mubr.msk.f32.vlgmr.msra.gmra.mxu0 %vm676_vm4, %v5585_v16  ;;  %5588 = vmatmul.mubr.msk.f32.vlgmr.msra.gmra.mxu1 %vm676_vm4, %v5585_v16 }
 0x5a7   : > { %5380 = vmatprep.mubr.f32.mxu0 %v5769_v0 }
 0x5a8   : > { %5346 = vmatprep.subr.mxu0 %v5097_v60 }
 0x5a9   : > { %5347 = vmatpush1.msra.mxu0 %v5096_v6 }
 0x5aa   : > { %5589 = vmatmul.mubr.msk.f32.vlgmr.msra.gmra.mxu0 %vm676_vm4, %v5585_v16 }
 0x5e1   : > { %v2428_v24 = vpop.f32.mrf.mxu0 }
 0x5e3   : > { %v2430_v42 = vpop.f32.mrf.mxu0 }
 0x619   : > { %v2357_v32 = vpop.f32.mrf.mxu1 }
 0x61b   : > { %v2359_v56 = vpop.f32.mrf.mxu1 }
 0x61d   : > { %v2570_v41 = vpop.f32.mrf.mxu0 }
 0x61e   : > { %v2499_v11 = vpop.f32.mrf.mxu1 }
 0x61f   : > { %v6839_v54 = vpop.f32.mrf.mxu0 }
 0x620   : > { %v2501_v12 = vpop.f32.mrf.mxu1 }
 0x622   : > { %v2715_v4 = vpop.f32.mrf.mxu0  ;;  %v2644_v63 = vpop.f32.mrf.mxu1 }
 0x623   : > { %v2645_v16 = vadd.f32 %v2644_v63, %v2357_v32  ;;  %v2716_v22 = vadd.f32 %v2715_v4, %v2428_v24 }
 0x624   : > { %v2717_v36 = vpop.f32.mrf.mxu0  ;;  %v2646_v26 = vpop.f32.mrf.mxu1 }
 0x625   : > { %v2647_v5 = vadd.f32 %v2646_v26, %v2359_v56  ;;  %v2718_v6 = vadd.f32 %v2717_v36, %v2430_v42 }
 0x626   : > { %v2857_v8 = vpop.f32.mrf.mxu0  ;;  %v2786_v37 = vpop.f32.mrf.mxu1 }
 0x627   : > { %v2787_v1 = vadd.f32 %v2786_v37, %v2499_v11  ;;  %v2858_v60 = vadd.f32 %v2857_v8, %v2570_v41 }
 0x628   : > { %v6841_v0 = vpop.f32.mrf.mxu0  ;;  %v2788_v49 = vpop.f32.mrf.mxu1 }
 0x629   : > { %v2860_v42 = vadd.f32 %v6841_v0, %v6839_v54 }
 0x62a   : > { %v3080_v23 = vpop.f32.mrf.mxu0  ;;  %v3009_v25 = vpop.f32.mrf.mxu1 }
 0x62b   : > { %v3227_v27 = vadd.f32 %v3009_v25, %v2645_v16 }
 0x62c   : > { %v3082_v30 = vpop.f32.mrf.mxu0  ;;  %v3011_v21 = vpop.f32.mrf.mxu1 }
 0x62d   : > { %v3228_v51 = vadd.f32 %v3011_v21, %v2647_v5  ;;  %v3230_v24 = vadd.f32 %v3082_v30, %v2718_v6 }
 0x62e   : > { %v3222_v20 = vpop.f32.mrf.mxu0  ;;  %v3151_v43 = vpop.f32.mrf.mxu1 }
 0x62f   : > { %v3233_v41 = vadd.f32 %v3222_v20, %v2858_v60 }
 0x630   : > { %v6843_v48 = vpop.f32.mrf.mxu0  ;;  %v3153_v31 = vpop.f32.mrf.mxu1 }
 0x632   : > { %v3452_v35 = vpop.f32.mrf.mxu0  ;;  %v3381_v38 = vpop.f32.mrf.mxu1 }
 0x633   : > { %v3599_v58 = vadd.f32 %v3381_v38, %v3227_v27 }
 0x634   : > { %v3454_v28 = vpop.f32.mrf.mxu0  ;;  %v3383_v34 = vpop.f32.mrf.mxu1 }
 0x635   : > { %v3602_v36 = vadd.f32 %v3454_v28, %v3230_v24 }
 0x636   : > { %v6845_v33 = vpop.f32.mrf.mxu0  ;;  %v3523_v40 = vpop.f32.mrf.mxu1 }
 0x637   : > { %v3605_v38 = vadd.f32 %v6845_v33, %v3233_v41 }
 0x638   : > { %v6847_v17 = vpop.f32.mrf.mxu0  ;;  %v3525_v44 = vpop.f32.mrf.mxu1 }
 0x639   : > { %6944 = vst [vmem:[#allocation10_spill] sm:$0xff] %v6847_v17  ;;  %v3231_v17 = vadd.f32 %v3151_v43, %v2787_v1 }
 0x63a   : > { %v3749_v45 = vpop.f32.mrf.mxu0 }
 0x63b   : > { %v3678_v10 = vpop.f32.mrf.mxu1  ;;  %v3603_v25 = vadd.f32 %v3523_v40, %v3231_v17 }
 0x63c   : > { %v3751_v62 = vpop.f32.mrf.mxu0  ;;  %v3896_v32 = vadd.f32 %v3678_v10, %v3599_v58 }
 0x63d   : > { %v3680_v18 = vpop.f32.mrf.mxu1 }
 0x63e   : > { %v6849_v9 = vpop.f32.mrf.mxu0 }
 0x63f   : > { %v3820_v7 = vpop.f32.mrf.mxu1  ;;  %6945 = vst [vmem:[#allocation11_spill] sm:$0xff] %v6849_v9  ;;  %v2789_v9 = vadd.f32 %v2788_v49, %v2501_v12 }
 0x640   : > { %v6851_v19 = vpop.f32.mrf.mxu0 }
 0x641   : > { %v3822_v50 = vpop.f32.mrf.mxu1  ;;  %6946 = vst [vmem:[#allocation12_spill] sm:$0xff] %v6851_v19  ;;  %v3229_v19 = vadd.f32 %v3080_v23, %v2716_v22  ;;  %v3232_v26 = vadd.f32 %v3153_v31, %v2789_v9  ;;  %v3900_v23 = vadd.f32 %v3820_v7, %v3603_v25  ;;  %v3234_v31 = vadd.f32 %v6843_v48, %v2860_v42 }
 0x642   : > { %v4121_v14 = vpop.f32.mrf.mxu0 }
 0x643   : > { %v4050_v15 = vpop.f32.mrf.mxu1  ;;  %v3601_v56 = vadd.f32 %v3452_v35, %v3229_v19  ;;  %v3604_v49 = vadd.f32 %v3525_v44, %v3232_v26 }
 0x644   : > { %v4123_v59 = vpop.f32.mrf.mxu0  ;;  %v4268_v37 = vadd.f32 %v4050_v15, %v3896_v32 }
 0x645   : > { %v4052_v55 = vpop.f32.mrf.mxu1  ;;  %v3898_v12 = vadd.f32 %v3749_v45, %v3601_v56  ;;  %v3901_v10 = vadd.f32 %v3822_v50, %v3604_v49  ;;  %v6949_v45 = vld [vmem:[#allocation10_spill] sm:$0xff] }
 0x646   : > { %v3606_v44 = vadd.f32 %v6949_v45, %v3234_v31 }
 0x647   : > { %v4270_v40 = vadd.f32 %v4121_v14, %v3898_v12 }
 0x648   : > { %v6951_v50 = vld [vmem:[#allocation12_spill] sm:$0xff] }
 0x64e   : > { %v4192_v29 = vpop.f32.mrf.mxu1 }
 0x64f   : > { %v4272_v54 = vadd.f32 %v4192_v29, %v3900_v23  ;;  %v3903_v29 = vadd.f32 %v6951_v50, %v3606_v44 }
 0x650   : > { %v4194_v39 = vpop.f32.mrf.mxu1 }
 0x651   : > { %v4273_v48 = vadd.f32 %v4194_v39, %v3901_v10 }
 0x652   : > { %v6853_v52 = vpop.f32.mrf.mxu0  ;;  %v4423_v57 = vpop.f32.mrf.mxu1 }
 0x653   : > { %6947 = vst [vmem:[#allocation13_spill] sm:$0xff] %v6853_v52  ;;  %v4641_v30 = vadd.f32 %v4423_v57, %v4268_v37  ;;  %v5399_v57 = vpop.permute.xlu1 %5398 }
 0x654   : > { %v6855_v13 = vpop.f32.mrf.mxu0  ;;  %v4425_v61 = vpop.f32.mrf.mxu1 }
 0x655   : > { %6948 = vst [vmem:[#allocation14_spill] sm:$0xff] %v6855_v13  ;;  %v3600_v13 = vadd.f32 %v3383_v34, %v3228_v51  ;;  %v3899_v34 = vadd.f32 %v3751_v62, %v3602_v36 }
 0x656   : > { %v4494_v46 = vpop.f32.mrf.mxu0  ;;  %v4565_v3 = vpop.f32.mrf.mxu1 }
 0x657   : > { %v3897_v11 = vadd.f32 %v3680_v18, %v3600_v13  ;;  %v6950_v18 = vld [vmem:[#allocation11_spill] sm:$0xff]  ;;  %v4271_v9 = vadd.f32 %v4123_v59, %v3899_v34  ;;  %v4643_v19 = vadd.f32 %v4494_v46, %v4270_v40 }
 0x658   : > { %v4496_v2 = vpop.f32.mrf.mxu0  ;;  %v4567_v53 = vpop.f32.mrf.mxu1  ;;  %v3902_v7 = vadd.f32 %v6950_v18, %v3605_v38 }
 0x659   : > { %v4269_v43 = vadd.f32 %v4052_v55, %v3897_v11  ;;  %v4645_v55 = vadd.f32 %v4565_v3, %v4272_v54  ;;  %v4646_v5 = vadd.f32 %v4567_v53, %v4273_v48 }
 0x65a   : > { %v4636_v47 = vpop.f32.mrf.mxu0  ;;  %v4796_v52 = vpop.f32.mrf.mxu1  ;;  %v6952_v13 = vld [vmem:[#allocation13_spill] sm:$0xff] }
 0x65b   : > { %v4642_v0 = vadd.f32 %v4425_v61, %v4269_v43  ;;  %v5014_v20 = vadd.f32 %v4796_v52, %v4641_v30  ;;  %v4274_v52 = vadd.f32 %v6952_v13, %v3902_v7  ;;  %v4644_v61 = vadd.f32 %v4496_v2, %v4271_v9 }
 0x65c   : > { %v6857_v63 = vpop.f32.mrf.mxu0  ;;  %v4798_v4 = vpop.f32.mrf.mxu1  ;;  %v6953_v46 = vld [vmem:[#allocation14_spill] sm:$0xff] }
 0x65d   : > { %v5015_v33 = vadd.f32 %v4798_v4, %v4642_v0  ;;  %v4275_v58 = vadd.f32 %v6953_v46, %v3903_v29  ;;  %v4647_v39 = vadd.f32 %v4636_v47, %v4274_v52 }
 0x65e   : > { %v4867_v21 = vpop.f32.mrf.mxu0  ;;  %v4938_v8 = vpop.f32.mrf.mxu1 }
 0x65f   : > { %v5016_v16 = vadd.f32 %v4867_v21, %v4643_v19  ;;  %v5018_v27 = vadd.f32 %v4938_v8, %v4645_v55  ;;  %v4648_v56 = vadd.f32 %v6857_v63, %v4275_v58 }
 0x660   : > { %v4869_v35 = vpop.f32.mrf.mxu0  ;;  %v4940_v17 = vpop.f32.mrf.mxu1 }
 0x661   : > { %v5017_v3 = vadd.f32 %v4869_v35, %v4644_v61  ;;  %v5019_v32 = vadd.f32 %v4940_v17, %v4646_v5 }
 0x662   : > { %v5009_v28 = vpop.f32.mrf.mxu0  ;;  %v5169_v15 = vpop.f32.mrf.mxu1 }
 0x663   : > { %v5387_v62 = vadd.f32 %v5169_v15, %v5014_v20  ;;  %v5020_v4 = vadd.f32 %v5009_v28, %v4647_v39 }
 0x664   : > { %v5011_v14 = vpop.f32.mrf.mxu0  ;;  %v5171_v22 = vpop.f32.mrf.mxu1 }
 0x665   : > { %v5401_v1 = vadd.f32 %v5399_v57, %v5387_v62  ;;  %v5388_v51 = vadd.f32 %v5171_v22, %v5015_v33  ;;  %v5021_v42 = vadd.f32 %v5011_v14, %v4648_v56 }
 0x666   : > { %v5240_v59 = vpop.f32.mrf.mxu0  ;;  %v5311_v60 = vpop.f32.mrf.mxu1 }
 0x667   : > { %v5389_v6 = vadd.f32 %v5240_v59, %v5016_v16  ;;  %5409 = vst [vmem:[%s6871_s17] sm:$0xff] %v5401_v1  ;;  %v5402_v2 = vadd.f32 %v5399_v57, %v5388_v51  ;;  %v5391_v53 = vadd.f32 %v5311_v60, %v5018_v27 }
 0x668   : > { %v5242_v24 = vpop.f32.mrf.mxu0  ;;  %v5313_v25 = vpop.f32.mrf.mxu1 }
 0x669   : > { %v5403_v47 = vadd.f32 %v5399_v57, %v5389_v6  ;;  %v5390_v26 = vadd.f32 %v5242_v24, %v5017_v3  ;;  %5410 = vst [vmem:[%s6871_s17 + $0x8] sm:$0xff] %v5402_v2  ;;  %v5405_v11 = vadd.f32 %v5399_v57, %v5391_v53  ;;  %v5392_v37 = vadd.f32 %v5313_v25, %v5019_v32 }
 0x66a   : > { %v5382_v21 = vpop.f32.mrf.mxu0 }
 0x66b   : > { %5411 = vst [vmem:[%s6871_s17 + $0x10] sm:$0xff] %v5403_v47  ;;  %v5404_v41 = vadd.f32 %v5399_v57, %v5390_v26  ;;  %v5393_v36 = vadd.f32 %v5382_v21, %v5020_v4  ;;  %5413 = vst [vmem:[%s6871_s17 + $0x20] sm:$0xff] %v5405_v11  ;;  %v5406_v63 = vadd.f32 %v5399_v57, %v5392_v37 }
 0x66c   : > { %v5384_v12 = vpop.f32.mrf.mxu0 }
 0x66d   : > { %5412 = vst [vmem:[%s6871_s17 + $0x18] sm:$0xff] %v5404_v41  ;;  %v5407_v8 = vadd.f32 %v5399_v57, %v5393_v36  ;;  %v5394_v49 = vadd.f32 %v5384_v12, %v5021_v42  ;;  %5414 = vst [vmem:[%s6871_s17 + $0x28] sm:$0xff] %v5406_v63 }
 0x66f   : > { %5415 = vst [vmem:[%s6871_s17 + $0x30] sm:$0xff] %v5407_v8  ;;  %v5408_v23 = vadd.f32 %v5399_v57, %v5394_v49 }
 0x671   : > { %5416 = vst [vmem:[%s6871_s17 + $0x38] sm:$0xff] %v5408_v23 }
 0x672   : > { %5713 = shalt.err (!%p5710_p0)
}
 0x673   : > { %s5714_s22 = scalar_lea.hbm %s5430_s20, 1024  ;;  %s5718_s16 = scalar_lea.hbm %s6931_s13, 2048 }
 0x674   : > { %p5715_p1 = scmp.ne.s32.totalorder %s5430_s20, %s5714_s22  ;;  %p5719_p4 = scmp.lt.s32.totalorder %s5430_s20, %s6931_s13 }
 0x675   : > { %p5720_p7 = scmp.lt.s32.totalorder %s5718_s16, %s5714_s22 }
 0x676   : > { %p5716_p2 = pnand %p5715_p1, %p5895_p5 }
 0x677   : > { %p5721_p8 = por %p5720_p7, %p5719_p4 }
 0x678   : > { %p5717_p3 = pneg %p5716_p2 }
 0x67a   : > { %p5722_p6 = pnand %p5721_p8, %p5717_p3 }
 0x67c   : > { %5725 = shalt.err (!%p5722_p6)
}
 0x67d   : > { %5607 = dma.vmem_to_hbm [thread:$0]  (%p5895_p5), %s5433_s21, 1024, %s5430_s20, %s5418_s30  }
 0x67e PF: > { %p5619_p9 = scmp.ge.s32.totalorder %s5764_s28, 2  ;;  %s5444_s9 = sand.u32 1, %s5752_s25  }
 0x67f   : > { %p6954_p10 = scmp.ne.s32.totalorder %s6938_s19, 0  ;;  %s5445_s29 = scalar_lea.sflag [#allocation4], %s5444_s9 }
 0x681   : > { %p5614_p11 = pnand %p5619_p9, %p6954_p10 }
 0x683   : > { %p5615_p12 = pneg %p5614_p11 }
 0x685   : > { %5747 = dma.done.wait (%p5615_p12), %s5445_s29, 1024  }
 0x686   : > { %5749 = vsyncadd (%p5615_p12), %s5445_s29, 4294966272  ;;  %s6955_s0 = sld [smem:[#allocation8_spill]]  ;;  %p24_p13 = scmp.ge.s32.totalorder %s5882_s14, 4  }
 0x687   : > { %s6956_s27 = sld [smem:[#allocation9_spill]]  ;;  %s6957_s25 = smov %s5756_s26 }
 0x688   : > { %s6959_s28 = smov %s5882_s14  ;;  %26 = sbr.rel (!%p24_p13) target bundleno = 7 (0x7), region = 142 }
 0x68c   : > { %s6958_s26 = smov %s6955_s0 }
 0x68d   :  { %5450 = vsyncpa [#allocation3], 1 }
 0x68e   :  { %5452 = vsyncpa [#allocation3 + $0x1], 1 }
 0x68f   :  { %5453 = vsyncpa [#allocation4], 1 }
 0x690   :  { %5455 = vsyncpa [#allocation4 + $0x1], 1 }

</bundles_post_ra>
